<compile_context>
chip_gen: v5e
topology: v5e:2x2
jax: 0.10.0
libtpu: 0.0.40
codegen_flags: <defaults>
</compile_context>

<pallas_src>
import jax
import jax.numpy as jnp
from jax import lax
from jax.experimental import pallas as pl
from jax.experimental.pallas import tpu as pltpu

_EPS = 1e-5


# ----------------------------------------------------------------------------
# Pallas kernel: one batch element per grid step.
# ----------------------------------------------------------------------------
def _one_hot_window(lout, length, stride, tap):
    """S[j, i] = 1.0 iff i == j*stride + tap  (valid-window row selector)."""
    rows = lax.broadcasted_iota(jnp.int32, (lout, length), 0)
    cols = lax.broadcasted_iota(jnp.int32, (lout, length), 1)
    return (cols == rows * stride + tap).astype(jnp.float32)


def _mid_mstm_kernel(x_ref, w1_ref, b1_ref,
                     w3_ref, b3_ref, w4_ref, b4_ref, w5_ref, b5_ref,
                     o1_ref, o2_ref, o3_ref, o4_ref, o5_ref):
    # x_ref: (L, 128) for the current batch element (channels on lanes).
    length = x_ref.shape[0]
    x = x_ref[...]

    # ---- Stage 1: all five BN+Conv1d(k=1)+ReLU fused into one 128x128 matmul.
    # stage1 channel layout: b1 [0:8], b2 [8:16], b3 [16:32], b4 [32:64], b5 [64:128]
    stage1 = jnp.dot(x, w1_ref[...], preferred_element_type=jnp.float32) + b1_ref[...]
    stage1 = jnp.maximum(stage1, 0.0)                       # (L, 128)

    def max_pool(src, lout, stride, ksize):
        acc = None
        for t in range(ksize):
            win = jnp.dot(_one_hot_window(lout, length, stride, t), src,
                          preferred_element_type=jnp.float32)
            acc = win if acc is None else jnp.maximum(acc, win)
        return acc

    def strided_conv_relu(src, lout, stride, w_taps_ref, b_ref):
        ksize = w_taps_ref.shape[0]
        acc = None
        for t in range(ksize):
            win = jnp.dot(_one_hot_window(lout, length, stride, t), src,
                          preferred_element_type=jnp.float32)       # (lout, Cin)
            contrib = jnp.dot(win, w_taps_ref[t],
                              preferred_element_type=jnp.float32)   # (lout, Cout)
            acc = contrib if acc is None else acc + contrib
        return jnp.maximum(acc + b_ref[...], 0.0)

    # Branch 1: MaxPool1d(k=3, s=3) on channels [0:8]
    o1_ref[...] = max_pool(stage1[:, 0:8], o1_ref.shape[0], 3, 3).astype(o1_ref.dtype)
    # Branch 2: MaxPool1d(k=4, s=3) on channels [8:16]
    o2_ref[...] = max_pool(stage1[:, 8:16], o2_ref.shape[0], 3, 4).astype(o2_ref.dtype)
    # Branch 3: BN+Conv1d(16->16, k=4, s=3)+ReLU on channels [16:32]
    o3_ref[...] = strided_conv_relu(stage1[:, 16:32], o3_ref.shape[0], 3,
                                    w3_ref, b3_ref).astype(o3_ref.dtype)
    # Branch 4: BN+Conv1d(32->32, k=3, s=3)+ReLU on channels [32:64]
    o4_ref[...] = strided_conv_relu(stage1[:, 32:64], o4_ref.shape[0], 3,
                                    w4_ref, b4_ref).astype(o4_ref.dtype)
    # Branch 5: BN+Conv1d(64->64, k=2, s=4)+ReLU on channels [64:128]
    o5_ref[...] = strided_conv_relu(stage1[:, 64:128], o5_ref.shape[0], 4,
                                    w5_ref, b5_ref).astype(o5_ref.dtype)


# ----------------------------------------------------------------------------
# Parameter folding (inference-mode BatchNorm folded into the convolutions).
# ----------------------------------------------------------------------------
def _fold_bn_into_pointwise_conv(bn, conv):
    gamma, beta, mean, var = bn
    w, b = conv                                  # w: (Cout, Cin, 1), b: (Cout,)
    w2 = w[:, :, 0]                              # (Cout, Cin)
    s = gamma / jnp.sqrt(var + _EPS)
    t = beta - mean * s
    w_eff = (w2 * s[None, :]).T                  # (Cin, Cout)  for (L,Cin)@W
    b_eff = w2 @ t + b                           # (Cout,)
    return w_eff, b_eff


def _fold_bn_into_strided_conv(bn, conv):
    gamma, beta, mean, var = bn
    w, b = conv                                  # w: (Cout, Cin, K), b: (Cout,)
    s = gamma / jnp.sqrt(var + _EPS)
    t = beta - mean * s
    w_taps = jnp.transpose(w * s[None, :, None], (2, 1, 0))   # (K, Cin, Cout)
    b_eff = jnp.sum(w, axis=2) @ t + b                        # (Cout,)
    return w_taps, b_eff


# ----------------------------------------------------------------------------
# Wrapper: layout plumbing + pallas_call + (metadata-only) flatten / concat.
# ----------------------------------------------------------------------------
def mid_mstm_icp(x, params):
    """x: (N, 128, L) float32. Returns (feamap, midout, midout_concat)."""
    n, cin, length = x.shape
    assert cin == 128

    # Fold stage-1 BN into the 1x1 convs and concatenate all branches -> 128x128.
    w1_parts, b1_parts = [], []
    for name in ("b1", "b2", "b3", "b4", "b5"):
        w_eff, b_eff = _fold_bn_into_pointwise_conv(params[name]["bn1"],
                                                    params[name]["conv1"])
        w1_parts.append(w_eff)
        b1_parts.append(b_eff)
    w1 = jnp.concatenate(w1_parts, axis=1)                    # (128, 128)
    b1 = jnp.concatenate(b1_parts)[None, :]                   # (1, 128)

    w3, b3 = _fold_bn_into_strided_conv(params["b3"]["bn2"], params["b3"]["conv2"])
    w4, b4 = _fold_bn_into_strided_conv(params["b4"]["bn2"], params["b4"]["conv2"])
    w5, b5 = _fold_bn_into_strided_conv(params["b5"]["bn2"], params["b5"]["conv2"])
    b3, b4, b5 = b3[None, :], b4[None, :], b5[None, :]

    # Valid-conv / valid-pool output lengths (PyTorch semantics, padding=0).
    l1 = (length - 3) // 3 + 1
    l2 = (length - 4) // 3 + 1
    l3 = (length - 4) // 3 + 1
    l4 = (length - 3) // 3 + 1
    l5 = (length - 2) // 4 + 1

    # Lane-dense layout: channels (=128) on the lane axis.
    x_t = jnp.transpose(x, (0, 2, 1))                         # (N, L, 128)

    def full_spec(a):
        return pl.BlockSpec(a.shape, lambda i, _nd=a.ndim: (0,) * _nd)

    out_dims = ((l1, 8), (l2, 8), (l3, 16), (l4, 32), (l5, 64))
    out_shape = tuple(jax.ShapeDtypeStruct((n, l, c), x.dtype) for l, c in out_dims)
    out_specs = [pl.BlockSpec((None, l, c), lambda i: (i, 0, 0)) for l, c in out_dims]

    o1, o2, o3, o4, o5 = pl.pallas_call(
        _mid_mstm_kernel,
        out_shape=out_shape,
        grid_spec=pltpu.PrefetchScalarGridSpec(
            num_scalar_prefetch=0,
            grid=(n,),
            in_specs=[
                pl.BlockSpec((None, length, 128), lambda i: (i, 0, 0)),   # x
                full_spec(w1), full_spec(b1),
                full_spec(w3), full_spec(b3),
                full_spec(w4), full_spec(b4),
                full_spec(w5), full_spec(b5),
            ],
            out_specs=out_specs,
        ),
        compiler_params=pltpu.CompilerParams(
            dimension_semantics=("parallel",)),
    )(x_t, w1, b1, w3, b3, w4, b4, w5, b5)

    # Back to PyTorch (N, C, Lout) order, then torch-style .view(N, -1) and cat.
    flats = [jnp.transpose(o, (0, 2, 1)).reshape(n, -1) for o in (o1, o2, o3, o4, o5)]
    feamap = flats
    midout = flats
    midout_concat = jnp.concatenate(flats, axis=1)
    return feamap, midout, midout_concat


# ----------------------------------------------------------------------------
# Pure-JAX reference mirroring the PyTorch module (inference-mode BN).
# ----------------------------------------------------------------------------
def _bn1d(x, bn):
    gamma, beta, mean, var = bn
    return ((x - mean[None, :, None]) / jnp.sqrt(var[None, :, None] + _EPS)
            * gamma[None, :, None] + beta[None, :, None])


def _conv1d(x, conv, stride):
    w, b = conv
    y = lax.conv_general_dilated(x, w, window_strides=(stride,), padding="VALID",
                                 dimension_numbers=("NCH", "OIH", "NCH"))
    return y + b[None, :, None]


def _maxpool1d(x, k, s):
    return lax.reduce_window(x, -jnp.inf, lax.max, (1, 1, k), (1, 1, s), "VALID")


def reference_forward(x, params):
    n = x.shape[0]

    def bncr(inp, p_bn, p_conv, stride):
        return jnp.maximum(_conv1d(_bn1d(inp, p_bn), p_conv, stride), 0.0)

    p = params
    o1 = _maxpool1d(bncr(x, p["b1"]["bn1"], p["b1"]["conv1"], 1), 3, 3)
    o2 = _maxpool1d(bncr(x, p["b2"]["bn1"], p["b2"]["conv1"], 1), 4, 3)
    o3 = bncr(bncr(x, p["b3"]["bn1"], p["b3"]["conv1"], 1), p["b3"]["bn2"], p["b3"]["conv2"], 3)
    o4 = bncr(bncr(x, p["b4"]["bn1"], p["b4"]["conv1"], 1), p["b4"]["bn2"], p["b4"]["conv2"], 3)
    o5 = bncr(bncr(x, p["b5"]["bn1"], p["b5"]["conv1"], 1), p["b5"]["bn2"], p["b5"]["conv2"], 4)
    flats = [o.reshape(n, -1) for o in (o1, o2, o3, o4, o5)]
    return flats, flats, jnp.concatenate(flats, axis=1)


def init_params(key):
    keys = iter(jax.random.split(key, 64))

    def bn(c):
        return (1.0 + 0.1 * jax.random.normal(next(keys), (c,), jnp.float32),   # gamma
                0.1 * jax.random.normal(next(keys), (c,), jnp.float32),          # beta
                0.1 * jax.random.normal(next(keys), (c,), jnp.float32),          # running_mean
                1.0 + 0.2 * jax.random.uniform(next(keys), (c,), jnp.float32))   # running_var

    def conv(cout, cin, k):
        scale = 1.0 / float((cin * k) ** 0.5)
        return (scale * jax.random.normal(next(keys), (cout, cin, k), jnp.float32),
                scale * jax.random.normal(next(keys), (cout,), jnp.float32))

    return {
        "b1": {"bn1": bn(128), "conv1": conv(8, 128, 1)},
        "b2": {"bn1": bn(128), "conv1": conv(8, 128, 1)},
        "b3": {"bn1": bn(128), "conv1": conv(16, 128, 1), "bn2": bn(16), "conv2": conv(16, 16, 4)},
        "b4": {"bn1": bn(128), "conv1": conv(32, 128, 1), "bn2": bn(32), "conv2": conv(32, 32, 3)},
        "b5": {"bn1": bn(128), "conv1": conv(64, 128, 1), "bn2": bn(64), "conv2": conv(64, 64, 2)},
    }


if __name__ == "__main__":
    key = jax.random.PRNGKey(0)
    kx, kp = jax.random.split(key)

    N, C, L = 2, 128, 96          # small shapes consistent with the module (C fixed at 128)
    x = jax.random.normal(kx, (N, C, L), dtype=jnp.float32)
    params = init_params(kp)

    fwd = jax.jit(mid_mstm_icp)
    feamap, midout, concat = fwd(x, params)
    concat = jax.block_until_ready(concat)

    feamap_ref, _, concat_ref = reference_forward(x, params)

    assert concat.shape == concat_ref.shape, (concat.shape, concat_ref.shape)
    for got, want in zip(feamap, feamap_ref):
        assert got.shape == want.shape, (got.shape, want.shape)
        assert jnp.allclose(got, want, rtol=1e-4, atol=1e-4), \
            float(jnp.max(jnp.abs(got - want)))
    assert jnp.allclose(concat, concat_ref, rtol=1e-4, atol=1e-4), \
        float(jnp.max(jnp.abs(concat - concat_ref)))

    print("KERNEL_OK")
</pallas_src>

<mosaic_0001>
module attributes {stable_mosaic.version = 11 : i64} {
  func.func @_mid_mstm_kernel(%arg0: i32, %arg1: memref<1x96x128xf32, #tpu.memory_space<vmem>>, %arg2: memref<128x128xf32, #tpu.memory_space<vmem>>, %arg3: memref<1x128xf32, #tpu.memory_space<vmem>>, %arg4: memref<4x16x16xf32, #tpu.memory_space<vmem>>, %arg5: memref<1x16xf32, #tpu.memory_space<vmem>>, %arg6: memref<3x32x32xf32, #tpu.memory_space<vmem>>, %arg7: memref<1x32xf32, #tpu.memory_space<vmem>>, %arg8: memref<2x64x64xf32, #tpu.memory_space<vmem>>, %arg9: memref<1x64xf32, #tpu.memory_space<vmem>>, %arg10: memref<1x32x8xf32, #tpu.memory_space<vmem>>, %arg11: memref<1x31x8xf32, #tpu.memory_space<vmem>>, %arg12: memref<1x31x16xf32, #tpu.memory_space<vmem>>, %arg13: memref<1x32x32xf32, #tpu.memory_space<vmem>>, %arg14: memref<1x24x64xf32, #tpu.memory_space<vmem>>) attributes {dimension_semantics = [#tpu.dimension_semantics<parallel>], iteration_bounds = array<i64: 2>, scalar_prefetch = 0 : i64, scratch_operands = 0 : i64, tpu.core_type = #tpu.core_type<tc>, window_params = [{transform_indices = @transform_0, window_bounds = array<i64: 1, 96, 128>}, {pipeline_mode = #tpu.pipeline_mode<synchronous>, transform_indices = @transform_1, window_bounds = array<i64: 128, 128>}, {pipeline_mode = #tpu.pipeline_mode<synchronous>, transform_indices = @transform_2, window_bounds = array<i64: 1, 128>}, {pipeline_mode = #tpu.pipeline_mode<synchronous>, transform_indices = @transform_3, window_bounds = array<i64: 4, 16, 16>}, {pipeline_mode = #tpu.pipeline_mode<synchronous>, transform_indices = @transform_4, window_bounds = array<i64: 1, 16>}, {pipeline_mode = #tpu.pipeline_mode<synchronous>, transform_indices = @transform_5, window_bounds = array<i64: 3, 32, 32>}, {pipeline_mode = #tpu.pipeline_mode<synchronous>, transform_indices = @transform_6, window_bounds = array<i64: 1, 32>}, {pipeline_mode = #tpu.pipeline_mode<synchronous>, transform_indices = @transform_7, window_bounds = array<i64: 2, 64, 64>}, {pipeline_mode = #tpu.pipeline_mode<synchronous>, transform_indices = @transform_8, window_bounds = array<i64: 1, 64>}, {transform_indices = @transform_9, window_bounds = array<i64: 1, 32, 8>}, {transform_indices = @transform_10, window_bounds = array<i64: 1, 31, 8>}, {transform_indices = @transform_11, window_bounds = array<i64: 1, 31, 16>}, {transform_indices = @transform_12, window_bounds = array<i64: 1, 32, 32>}, {transform_indices = @transform_13, window_bounds = array<i64: 1, 24, 64>}]} {
    %c0 = arith.constant 0 : index
    %c0_0 = arith.constant 0 : index
    %c0_1 = arith.constant 0 : index
    %0 = vector.load %arg1[%c0, %c0_0, %c0_1] : memref<1x96x128xf32, #tpu.memory_space<vmem>>, vector<1x96x128xf32>
    %1 = vector.shape_cast %0 : vector<1x96x128xf32> to vector<96x128xf32>
    %c0_2 = arith.constant 0 : index
    %c0_3 = arith.constant 0 : index
    %2 = vector.load %arg2[%c0_2, %c0_3] : memref<128x128xf32, #tpu.memory_space<vmem>>, vector<128x128xf32>
    %cst = arith.constant dense<0.000000e+00> : vector<96x128xf32>
    %3 = tpu.matmul %1, %2, %cst {dimension_numbers = #tpu.dot_dimension_numbers<[1], [0], [0], [1], [0, 0, 1, 1], [], []>} : vector<96x128xf32>, vector<128x128xf32>, vector<96x128xf32> -> vector<96x128xf32>
    %c0_4 = arith.constant 0 : index
    %c0_5 = arith.constant 0 : index
    %4 = vector.load %arg3[%c0_4, %c0_5] : memref<1x128xf32, #tpu.memory_space<vmem>>, vector<1x128xf32>
    %5 = vector.broadcast %4 : vector<1x128xf32> to vector<96x128xf32>
    %6 = arith.addf %3, %5 : vector<96x128xf32>
    %cst_6 = arith.constant 0.000000e+00 : f32
    %7 = vector.broadcast %cst_6 : f32 to vector<96x128xf32>
    %8 = arith.maximumf %6, %7 : vector<96x128xf32>
    %9 = vector.extract_strided_slice %8 {offsets = [0, 0], sizes = [96, 8], strides = [1, 1]} : vector<96x128xf32> to vector<96x8xf32>
    %10 = tpu.iota {dimensions = array<i32: 0>} : vector<32x96xi32>
    %11 = tpu.iota {dimensions = array<i32: 1>} : vector<32x96xi32>
    %c3_i32 = arith.constant 3 : i32
    %12 = vector.broadcast %c3_i32 : i32 to vector<32x96xi32>
    %13 = arith.muli %10, %12 : vector<32x96xi32>
    %c0_i32 = arith.constant 0 : i32
    %14 = vector.broadcast %c0_i32 : i32 to vector<32x96xi32>
    %15 = arith.addi %13, %14 : vector<32x96xi32>
    %16 = arith.cmpi eq, %11, %15 : vector<32x96xi32>
    %17 = arith.extui %16 : vector<32x96xi1> to vector<32x96xi32>
    %18 = arith.sitofp %17 : vector<32x96xi32> to vector<32x96xf32>
    %cst_7 = arith.constant dense<0.000000e+00> : vector<32x8xf32>
    %19 = tpu.matmul %18, %9, %cst_7 {dimension_numbers = #tpu.dot_dimension_numbers<[1], [0], [0], [1], [0, 0, 1, 1], [], []>} : vector<32x96xf32>, vector<96x8xf32>, vector<32x8xf32> -> vector<32x8xf32>
    %20 = tpu.iota {dimensions = array<i32: 0>} : vector<32x96xi32>
    %21 = tpu.iota {dimensions = array<i32: 1>} : vector<32x96xi32>
    %c3_i32_8 = arith.constant 3 : i32
    %22 = vector.broadcast %c3_i32_8 : i32 to vector<32x96xi32>
    %23 = arith.muli %20, %22 : vector<32x96xi32>
    %c1_i32 = arith.constant 1 : i32
    %24 = vector.broadcast %c1_i32 : i32 to vector<32x96xi32>
    %25 = arith.addi %23, %24 : vector<32x96xi32>
    %26 = arith.cmpi eq, %21, %25 : vector<32x96xi32>
    %27 = arith.extui %26 : vector<32x96xi1> to vector<32x96xi32>
    %28 = arith.sitofp %27 : vector<32x96xi32> to vector<32x96xf32>
    %cst_9 = arith.constant dense<0.000000e+00> : vector<32x8xf32>
    %29 = tpu.matmul %28, %9, %cst_9 {dimension_numbers = #tpu.dot_dimension_numbers<[1], [0], [0], [1], [0, 0, 1, 1], [], []>} : vector<32x96xf32>, vector<96x8xf32>, vector<32x8xf32> -> vector<32x8xf32>
    %30 = arith.maximumf %19, %29 : vector<32x8xf32>
    %31 = tpu.iota {dimensions = array<i32: 0>} : vector<32x96xi32>
    %32 = tpu.iota {dimensions = array<i32: 1>} : vector<32x96xi32>
    %c3_i32_10 = arith.constant 3 : i32
    %33 = vector.broadcast %c3_i32_10 : i32 to vector<32x96xi32>
    %34 = arith.muli %31, %33 : vector<32x96xi32>
    %c2_i32 = arith.constant 2 : i32
    %35 = vector.broadcast %c2_i32 : i32 to vector<32x96xi32>
    %36 = arith.addi %34, %35 : vector<32x96xi32>
    %37 = arith.cmpi eq, %32, %36 : vector<32x96xi32>
    %38 = arith.extui %37 : vector<32x96xi1> to vector<32x96xi32>
    %39 = arith.sitofp %38 : vector<32x96xi32> to vector<32x96xf32>
    %cst_11 = arith.constant dense<0.000000e+00> : vector<32x8xf32>
    %40 = tpu.matmul %39, %9, %cst_11 {dimension_numbers = #tpu.dot_dimension_numbers<[1], [0], [0], [1], [0, 0, 1, 1], [], []>} : vector<32x96xf32>, vector<96x8xf32>, vector<32x8xf32> -> vector<32x8xf32>
    %41 = arith.maximumf %30, %40 : vector<32x8xf32>
    %c0_12 = arith.constant 0 : index
    %c0_13 = arith.constant 0 : index
    %c0_14 = arith.constant 0 : index
    %42 = vector.load %arg10[%c0_12, %c0_13, %c0_14] : memref<1x32x8xf32, #tpu.memory_space<vmem>>, vector<1x32x8xf32>
    %43 = vector.shape_cast %42 : vector<1x32x8xf32> to vector<32x8xf32>
    %44 = vector.shape_cast %41 : vector<32x8xf32> to vector<1x32x8xf32>
    tpu.vector_store %arg10[%c0_12, %c0_13, %c0_14], %44 {strides = array<i32>} : memref<1x32x8xf32, #tpu.memory_space<vmem>>, vector<1x32x8xf32>,
    %45 = vector.extract_strided_slice %8 {offsets = [0, 8], sizes = [96, 8], strides = [1, 1]} : vector<96x128xf32> to vector<96x8xf32>
    %46 = tpu.iota {dimensions = array<i32: 0>} : vector<31x96xi32>
    %47 = tpu.iota {dimensions = array<i32: 1>} : vector<31x96xi32>
    %c3_i32_15 = arith.constant 3 : i32
    %48 = vector.broadcast %c3_i32_15 : i32 to vector<31x96xi32>
    %49 = arith.muli %46, %48 : vector<31x96xi32>
    %c0_i32_16 = arith.constant 0 : i32
    %50 = vector.broadcast %c0_i32_16 : i32 to vector<31x96xi32>
    %51 = arith.addi %49, %50 : vector<31x96xi32>
    %52 = arith.cmpi eq, %47, %51 : vector<31x96xi32>
    %53 = arith.extui %52 : vector<31x96xi1> to vector<31x96xi32>
    %54 = arith.sitofp %53 : vector<31x96xi32> to vector<31x96xf32>
    %cst_17 = arith.constant dense<0.000000e+00> : vector<31x8xf32>
    %55 = tpu.matmul %54, %45, %cst_17 {dimension_numbers = #tpu.dot_dimension_numbers<[1], [0], [0], [1], [0, 0, 1, 1], [], []>} : vector<31x96xf32>, vector<96x8xf32>, vector<31x8xf32> -> vector<31x8xf32>
    %56 = tpu.iota {dimensions = array<i32: 0>} : vector<31x96xi32>
    %57 = tpu.iota {dimensions = array<i32: 1>} : vector<31x96xi32>
    %c3_i32_18 = arith.constant 3 : i32
    %58 = vector.broadcast %c3_i32_18 : i32 to vector<31x96xi32>
    %59 = arith.muli %56, %58 : vector<31x96xi32>
    %c1_i32_19 = arith.constant 1 : i32
    %60 = vector.broadcast %c1_i32_19 : i32 to vector<31x96xi32>
    %61 = arith.addi %59, %60 : vector<31x96xi32>
    %62 = arith.cmpi eq, %57, %61 : vector<31x96xi32>
    %63 = arith.extui %62 : vector<31x96xi1> to vector<31x96xi32>
    %64 = arith.sitofp %63 : vector<31x96xi32> to vector<31x96xf32>
    %cst_20 = arith.constant dense<0.000000e+00> : vector<31x8xf32>
    %65 = tpu.matmul %64, %45, %cst_20 {dimension_numbers = #tpu.dot_dimension_numbers<[1], [0], [0], [1], [0, 0, 1, 1], [], []>} : vector<31x96xf32>, vector<96x8xf32>, vector<31x8xf32> -> vector<31x8xf32>
    %66 = arith.maximumf %55, %65 : vector<31x8xf32>
    %67 = tpu.iota {dimensions = array<i32: 0>} : vector<31x96xi32>
    %68 = tpu.iota {dimensions = array<i32: 1>} : vector<31x96xi32>
    %c3_i32_21 = arith.constant 3 : i32
    %69 = vector.broadcast %c3_i32_21 : i32 to vector<31x96xi32>
    %70 = arith.muli %67, %69 : vector<31x96xi32>
    %c2_i32_22 = arith.constant 2 : i32
    %71 = vector.broadcast %c2_i32_22 : i32 to vector<31x96xi32>
    %72 = arith.addi %70, %71 : vector<31x96xi32>
    %73 = arith.cmpi eq, %68, %72 : vector<31x96xi32>
    %74 = arith.extui %73 : vector<31x96xi1> to vector<31x96xi32>
    %75 = arith.sitofp %74 : vector<31x96xi32> to vector<31x96xf32>
    %cst_23 = arith.constant dense<0.000000e+00> : vector<31x8xf32>
    %76 = tpu.matmul %75, %45, %cst_23 {dimension_numbers = #tpu.dot_dimension_numbers<[1], [0], [0], [1], [0, 0, 1, 1], [], []>} : vector<31x96xf32>, vector<96x8xf32>, vector<31x8xf32> -> vector<31x8xf32>
    %77 = arith.maximumf %66, %76 : vector<31x8xf32>
    %78 = tpu.iota {dimensions = array<i32: 0>} : vector<31x96xi32>
    %79 = tpu.iota {dimensions = array<i32: 1>} : vector<31x96xi32>
    %c3_i32_24 = arith.constant 3 : i32
    %80 = vector.broadcast %c3_i32_24 : i32 to vector<31x96xi32>
    %81 = arith.muli %78, %80 : vector<31x96xi32>
    %c3_i32_25 = arith.constant 3 : i32
    %82 = vector.broadcast %c3_i32_25 : i32 to vector<31x96xi32>
    %83 = arith.addi %81, %82 : vector<31x96xi32>
    %84 = arith.cmpi eq, %79, %83 : vector<31x96xi32>
    %85 = arith.extui %84 : vector<31x96xi1> to vector<31x96xi32>
    %86 = arith.sitofp %85 : vector<31x96xi32> to vector<31x96xf32>
    %cst_26 = arith.constant dense<0.000000e+00> : vector<31x8xf32>
    %87 = tpu.matmul %86, %45, %cst_26 {dimension_numbers = #tpu.dot_dimension_numbers<[1], [0], [0], [1], [0, 0, 1, 1], [], []>} : vector<31x96xf32>, vector<96x8xf32>, vector<31x8xf32> -> vector<31x8xf32>
    %88 = arith.maximumf %77, %87 : vector<31x8xf32>
    %c0_27 = arith.constant 0 : index
    %c0_28 = arith.constant 0 : index
    %c0_29 = arith.constant 0 : index
    %89 = vector.load %arg11[%c0_27, %c0_28, %c0_29] : memref<1x31x8xf32, #tpu.memory_space<vmem>>, vector<1x31x8xf32>
    %90 = vector.shape_cast %89 : vector<1x31x8xf32> to vector<31x8xf32>
    %91 = vector.shape_cast %88 : vector<31x8xf32> to vector<1x31x8xf32>
    tpu.vector_store %arg11[%c0_27, %c0_28, %c0_29], %91 {strides = array<i32>} : memref<1x31x8xf32, #tpu.memory_space<vmem>>, vector<1x31x8xf32>,
    %92 = vector.extract_strided_slice %8 {offsets = [0, 16], sizes = [96, 16], strides = [1, 1]} : vector<96x128xf32> to vector<96x16xf32>
    %93 = tpu.iota {dimensions = array<i32: 0>} : vector<31x96xi32>
    %94 = tpu.iota {dimensions = array<i32: 1>} : vector<31x96xi32>
    %c3_i32_30 = arith.constant 3 : i32
    %95 = vector.broadcast %c3_i32_30 : i32 to vector<31x96xi32>
    %96 = arith.muli %93, %95 : vector<31x96xi32>
    %c0_i32_31 = arith.constant 0 : i32
    %97 = vector.broadcast %c0_i32_31 : i32 to vector<31x96xi32>
    %98 = arith.addi %96, %97 : vector<31x96xi32>
    %99 = arith.cmpi eq, %94, %98 : vector<31x96xi32>
    %100 = arith.extui %99 : vector<31x96xi1> to vector<31x96xi32>
    %101 = arith.sitofp %100 : vector<31x96xi32> to vector<31x96xf32>
    %cst_32 = arith.constant dense<0.000000e+00> : vector<31x16xf32>
    %102 = tpu.matmul %101, %92, %cst_32 {dimension_numbers = #tpu.dot_dimension_numbers<[1], [0], [0], [1], [0, 0, 1, 1], [], []>} : vector<31x96xf32>, vector<96x16xf32>, vector<31x16xf32> -> vector<31x16xf32>
    %c0_33 = arith.constant 0 : index
    %c0_34 = arith.constant 0 : index
    %c0_35 = arith.constant 0 : index
    %103 = vector.load %arg4[%c0_33, %c0_34, %c0_35] : memref<4x16x16xf32, #tpu.memory_space<vmem>>, vector<1x16x16xf32>
    %104 = vector.shape_cast %103 : vector<1x16x16xf32> to vector<16x16xf32>
    %cst_36 = arith.constant dense<0.000000e+00> : vector<31x16xf32>
    %105 = tpu.matmul %102, %104, %cst_36 {dimension_numbers = #tpu.dot_dimension_numbers<[1], [0], [0], [1], [0, 0, 1, 1], [], []>} : vector<31x16xf32>, vector<16x16xf32>, vector<31x16xf32> -> vector<31x16xf32>
    %106 = tpu.iota {dimensions = array<i32: 0>} : vector<31x96xi32>
    %107 = tpu.iota {dimensions = array<i32: 1>} : vector<31x96xi32>
    %c3_i32_37 = arith.constant 3 : i32
    %108 = vector.broadcast %c3_i32_37 : i32 to vector<31x96xi32>
    %109 = arith.muli %106, %108 : vector<31x96xi32>
    %c1_i32_38 = arith.constant 1 : i32
    %110 = vector.broadcast %c1_i32_38 : i32 to vector<31x96xi32>
    %111 = arith.addi %109, %110 : vector<31x96xi32>
    %112 = arith.cmpi eq, %107, %111 : vector<31x96xi32>
    %113 = arith.extui %112 : vector<31x96xi1> to vector<31x96xi32>
    %114 = arith.sitofp %113 : vector<31x96xi32> to vector<31x96xf32>
    %cst_39 = arith.constant dense<0.000000e+00> : vector<31x16xf32>
    %115 = tpu.matmul %114, %92, %cst_39 {dimension_numbers = #tpu.dot_dimension_numbers<[1], [0], [0], [1], [0, 0, 1, 1], [], []>} : vector<31x96xf32>, vector<96x16xf32>, vector<31x16xf32> -> vector<31x16xf32>
    %c1 = arith.constant 1 : index
    %c0_40 = arith.constant 0 : index
    %c0_41 = arith.constant 0 : index
    %116 = vector.load %arg4[%c1, %c0_40, %c0_41] : memref<4x16x16xf32, #tpu.memory_space<vmem>>, vector<1x16x16xf32>
    %117 = vector.shape_cast %116 : vector<1x16x16xf32> to vector<16x16xf32>
    %cst_42 = arith.constant dense<0.000000e+00> : vector<31x16xf32>
    %118 = tpu.matmul %115, %117, %cst_42 {dimension_numbers = #tpu.dot_dimension_numbers<[1], [0], [0], [1], [0, 0, 1, 1], [], []>} : vector<31x16xf32>, vector<16x16xf32>, vector<31x16xf32> -> vector<31x16xf32>
    %119 = arith.addf %105, %118 : vector<31x16xf32>
    %120 = tpu.iota {dimensions = array<i32: 0>} : vector<31x96xi32>
    %121 = tpu.iota {dimensions = array<i32: 1>} : vector<31x96xi32>
    %c3_i32_43 = arith.constant 3 : i32
    %122 = vector.broadcast %c3_i32_43 : i32 to vector<31x96xi32>
    %123 = arith.muli %120, %122 : vector<31x96xi32>
    %c2_i32_44 = arith.constant 2 : i32
    %124 = vector.broadcast %c2_i32_44 : i32 to vector<31x96xi32>
    %125 = arith.addi %123, %124 : vector<31x96xi32>
    %126 = arith.cmpi eq, %121, %125 : vector<31x96xi32>
    %127 = arith.extui %126 : vector<31x96xi1> to vector<31x96xi32>
    %128 = arith.sitofp %127 : vector<31x96xi32> to vector<31x96xf32>
    %cst_45 = arith.constant dense<0.000000e+00> : vector<31x16xf32>
    %129 = tpu.matmul %128, %92, %cst_45 {dimension_numbers = #tpu.dot_dimension_numbers<[1], [0], [0], [1], [0, 0, 1, 1], [], []>} : vector<31x96xf32>, vector<96x16xf32>, vector<31x16xf32> -> vector<31x16xf32>
    %c2 = arith.constant 2 : index
    %c0_46 = arith.constant 0 : index
    %c0_47 = arith.constant 0 : index
    %130 = vector.load %arg4[%c2, %c0_46, %c0_47] : memref<4x16x16xf32, #tpu.memory_space<vmem>>, vector<1x16x16xf32>
    %131 = vector.shape_cast %130 : vector<1x16x16xf32> to vector<16x16xf32>
    %cst_48 = arith.constant dense<0.000000e+00> : vector<31x16xf32>
    %132 = tpu.matmul %129, %131, %cst_48 {dimension_numbers = #tpu.dot_dimension_numbers<[1], [0], [0], [1], [0, 0, 1, 1], [], []>} : vector<31x16xf32>, vector<16x16xf32>, vector<31x16xf32> -> vector<31x16xf32>
    %133 = arith.addf %119, %132 : vector<31x16xf32>
    %134 = tpu.iota {dimensions = array<i32: 0>} : vector<31x96xi32>
    %135 = tpu.iota {dimensions = array<i32: 1>} : vector<31x96xi32>
    %c3_i32_49 = arith.constant 3 : i32
    %136 = vector.broadcast %c3_i32_49 : i32 to vector<31x96xi32>
    %137 = arith.muli %134, %136 : vector<31x96xi32>
    %c3_i32_50 = arith.constant 3 : i32
    %138 = vector.broadcast %c3_i32_50 : i32 to vector<31x96xi32>
    %139 = arith.addi %137, %138 : vector<31x96xi32>
    %140 = arith.cmpi eq, %135, %139 : vector<31x96xi32>
    %141 = arith.extui %140 : vector<31x96xi1> to vector<31x96xi32>
    %142 = arith.sitofp %141 : vector<31x96xi32> to vector<31x96xf32>
    %cst_51 = arith.constant dense<0.000000e+00> : vector<31x16xf32>
    %143 = tpu.matmul %142, %92, %cst_51 {dimension_numbers = #tpu.dot_dimension_numbers<[1], [0], [0], [1], [0, 0, 1, 1], [], []>} : vector<31x96xf32>, vector<96x16xf32>, vector<31x16xf32> -> vector<31x16xf32>
    %c3 = arith.constant 3 : index
    %c0_52 = arith.constant 0 : index
    %c0_53 = arith.constant 0 : index
    %144 = vector.load %arg4[%c3, %c0_52, %c0_53] : memref<4x16x16xf32, #tpu.memory_space<vmem>>, vector<1x16x16xf32>
    %145 = vector.shape_cast %144 : vector<1x16x16xf32> to vector<16x16xf32>
    %cst_54 = arith.constant dense<0.000000e+00> : vector<31x16xf32>
    %146 = tpu.matmul %143, %145, %cst_54 {dimension_numbers = #tpu.dot_dimension_numbers<[1], [0], [0], [1], [0, 0, 1, 1], [], []>} : vector<31x16xf32>, vector<16x16xf32>, vector<31x16xf32> -> vector<31x16xf32>
    %147 = arith.addf %133, %146 : vector<31x16xf32>
    %c0_55 = arith.constant 0 : index
    %c0_56 = arith.constant 0 : index
    %148 = vector.load %arg5[%c0_55, %c0_56] : memref<1x16xf32, #tpu.memory_space<vmem>>, vector<1x16xf32>
    %149 = vector.broadcast %148 : vector<1x16xf32> to vector<31x16xf32>
    %150 = arith.addf %147, %149 : vector<31x16xf32>
    %cst_57 = arith.constant 0.000000e+00 : f32
    %151 = vector.broadcast %cst_57 : f32 to vector<31x16xf32>
    %152 = arith.maximumf %150, %151 : vector<31x16xf32>
    %c0_58 = arith.constant 0 : index
    %c0_59 = arith.constant 0 : index
    %c0_60 = arith.constant 0 : index
    %153 = vector.load %arg12[%c0_58, %c0_59, %c0_60] : memref<1x31x16xf32, #tpu.memory_space<vmem>>, vector<1x31x16xf32>
    %154 = vector.shape_cast %153 : vector<1x31x16xf32> to vector<31x16xf32>
    %155 = vector.shape_cast %152 : vector<31x16xf32> to vector<1x31x16xf32>
    tpu.vector_store %arg12[%c0_58, %c0_59, %c0_60], %155 {strides = array<i32>} : memref<1x31x16xf32, #tpu.memory_space<vmem>>, vector<1x31x16xf32>,
    %156 = vector.extract_strided_slice %8 {offsets = [0, 32], sizes = [96, 32], strides = [1, 1]} : vector<96x128xf32> to vector<96x32xf32>
    %157 = tpu.iota {dimensions = array<i32: 0>} : vector<32x96xi32>
    %158 = tpu.iota {dimensions = array<i32: 1>} : vector<32x96xi32>
    %c3_i32_61 = arith.constant 3 : i32
    %159 = vector.broadcast %c3_i32_61 : i32 to vector<32x96xi32>
    %160 = arith.muli %157, %159 : vector<32x96xi32>
    %c0_i32_62 = arith.constant 0 : i32
    %161 = vector.broadcast %c0_i32_62 : i32 to vector<32x96xi32>
    %162 = arith.addi %160, %161 : vector<32x96xi32>
    %163 = arith.cmpi eq, %158, %162 : vector<32x96xi32>
    %164 = arith.extui %163 : vector<32x96xi1> to vector<32x96xi32>
    %165 = arith.sitofp %164 : vector<32x96xi32> to vector<32x96xf32>
    %cst_63 = arith.constant dense<0.000000e+00> : vector<32x32xf32>
    %166 = tpu.matmul %165, %156, %cst_63 {dimension_numbers = #tpu.dot_dimension_numbers<[1], [0], [0], [1], [0, 0, 1, 1], [], []>} : vector<32x96xf32>, vector<96x32xf32>, vector<32x32xf32> -> vector<32x32xf32>
    %c0_64 = arith.constant 0 : index
    %c0_65 = arith.constant 0 : index
    %c0_66 = arith.constant 0 : index
    %167 = vector.load %arg6[%c0_64, %c0_65, %c0_66] : memref<3x32x32xf32, #tpu.memory_space<vmem>>, vector<1x32x32xf32>
    %168 = vector.shape_cast %167 : vector<1x32x32xf32> to vector<32x32xf32>
    %cst_67 = arith.constant dense<0.000000e+00> : vector<32x32xf32>
    %169 = tpu.matmul %166, %168, %cst_67 {dimension_numbers = #tpu.dot_dimension_numbers<[1], [0], [0], [1], [0, 0, 1, 1], [], []>} : vector<32x32xf32>, vector<32x32xf32>, vector<32x32xf32> -> vector<32x32xf32>
    %170 = tpu.iota {dimensions = array<i32: 0>} : vector<32x96xi32>
    %171 = tpu.iota {dimensions = array<i32: 1>} : vector<32x96xi32>
    %c3_i32_68 = arith.constant 3 : i32
    %172 = vector.broadcast %c3_i32_68 : i32 to vector<32x96xi32>
    %173 = arith.muli %170, %172 : vector<32x96xi32>
    %c1_i32_69 = arith.constant 1 : i32
    %174 = vector.broadcast %c1_i32_69 : i32 to vector<32x96xi32>
    %175 = arith.addi %173, %174 : vector<32x96xi32>
    %176 = arith.cmpi eq, %171, %175 : vector<32x96xi32>
    %177 = arith.extui %176 : vector<32x96xi1> to vector<32x96xi32>
    %178 = arith.sitofp %177 : vector<32x96xi32> to vector<32x96xf32>
    %cst_70 = arith.constant dense<0.000000e+00> : vector<32x32xf32>
    %179 = tpu.matmul %178, %156, %cst_70 {dimension_numbers = #tpu.dot_dimension_numbers<[1], [0], [0], [1], [0, 0, 1, 1], [], []>} : vector<32x96xf32>, vector<96x32xf32>, vector<32x32xf32> -> vector<32x32xf32>
    %c1_71 = arith.constant 1 : index
    %c0_72 = arith.constant 0 : index
    %c0_73 = arith.constant 0 : index
    %180 = vector.load %arg6[%c1_71, %c0_72, %c0_73] : memref<3x32x32xf32, #tpu.memory_space<vmem>>, vector<1x32x32xf32>
    %181 = vector.shape_cast %180 : vector<1x32x32xf32> to vector<32x32xf32>
    %cst_74 = arith.constant dense<0.000000e+00> : vector<32x32xf32>
    %182 = tpu.matmul %179, %181, %cst_74 {dimension_numbers = #tpu.dot_dimension_numbers<[1], [0], [0], [1], [0, 0, 1, 1], [], []>} : vector<32x32xf32>, vector<32x32xf32>, vector<32x32xf32> -> vector<32x32xf32>
    %183 = arith.addf %169, %182 : vector<32x32xf32>
    %184 = tpu.iota {dimensions = array<i32: 0>} : vector<32x96xi32>
    %185 = tpu.iota {dimensions = array<i32: 1>} : vector<32x96xi32>
    %c3_i32_75 = arith.constant 3 : i32
    %186 = vector.broadcast %c3_i32_75 : i32 to vector<32x96xi32>
    %187 = arith.muli %184, %186 : vector<32x96xi32>
    %c2_i32_76 = arith.constant 2 : i32
    %188 = vector.broadcast %c2_i32_76 : i32 to vector<32x96xi32>
    %189 = arith.addi %187, %188 : vector<32x96xi32>
    %190 = arith.cmpi eq, %185, %189 : vector<32x96xi32>
    %191 = arith.extui %190 : vector<32x96xi1> to vector<32x96xi32>
    %192 = arith.sitofp %191 : vector<32x96xi32> to vector<32x96xf32>
    %cst_77 = arith.constant dense<0.000000e+00> : vector<32x32xf32>
    %193 = tpu.matmul %192, %156, %cst_77 {dimension_numbers = #tpu.dot_dimension_numbers<[1], [0], [0], [1], [0, 0, 1, 1], [], []>} : vector<32x96xf32>, vector<96x32xf32>, vector<32x32xf32> -> vector<32x32xf32>
    %c2_78 = arith.constant 2 : index
    %c0_79 = arith.constant 0 : index
    %c0_80 = arith.constant 0 : index
    %194 = vector.load %arg6[%c2_78, %c0_79, %c0_80] : memref<3x32x32xf32, #tpu.memory_space<vmem>>, vector<1x32x32xf32>
    %195 = vector.shape_cast %194 : vector<1x32x32xf32> to vector<32x32xf32>
    %cst_81 = arith.constant dense<0.000000e+00> : vector<32x32xf32>
    %196 = tpu.matmul %193, %195, %cst_81 {dimension_numbers = #tpu.dot_dimension_numbers<[1], [0], [0], [1], [0, 0, 1, 1], [], []>} : vector<32x32xf32>, vector<32x32xf32>, vector<32x32xf32> -> vector<32x32xf32>
    %197 = arith.addf %183, %196 : vector<32x32xf32>
    %c0_82 = arith.constant 0 : index
    %c0_83 = arith.constant 0 : index
    %198 = vector.load %arg7[%c0_82, %c0_83] : memref<1x32xf32, #tpu.memory_space<vmem>>, vector<1x32xf32>
    %199 = vector.broadcast %198 : vector<1x32xf32> to vector<32x32xf32>
    %200 = arith.addf %197, %199 : vector<32x32xf32>
    %cst_84 = arith.constant 0.000000e+00 : f32
    %201 = vector.broadcast %cst_84 : f32 to vector<32x32xf32>
    %202 = arith.maximumf %200, %201 : vector<32x32xf32>
    %c0_85 = arith.constant 0 : index
    %c0_86 = arith.constant 0 : index
    %c0_87 = arith.constant 0 : index
    %203 = vector.load %arg13[%c0_85, %c0_86, %c0_87] : memref<1x32x32xf32, #tpu.memory_space<vmem>>, vector<1x32x32xf32>
    %204 = vector.shape_cast %203 : vector<1x32x32xf32> to vector<32x32xf32>
    %205 = vector.shape_cast %202 : vector<32x32xf32> to vector<1x32x32xf32>
    tpu.vector_store %arg13[%c0_85, %c0_86, %c0_87], %205 {strides = array<i32>} : memref<1x32x32xf32, #tpu.memory_space<vmem>>, vector<1x32x32xf32>,
    %206 = vector.extract_strided_slice %8 {offsets = [0, 64], sizes = [96, 64], strides = [1, 1]} : vector<96x128xf32> to vector<96x64xf32>
    %207 = tpu.iota {dimensions = array<i32: 0>} : vector<24x96xi32>
    %208 = tpu.iota {dimensions = array<i32: 1>} : vector<24x96xi32>
    %c4_i32 = arith.constant 4 : i32
    %209 = vector.broadcast %c4_i32 : i32 to vector<24x96xi32>
    %210 = arith.muli %207, %209 : vector<24x96xi32>
    %c0_i32_88 = arith.constant 0 : i32
    %211 = vector.broadcast %c0_i32_88 : i32 to vector<24x96xi32>
    %212 = arith.addi %210, %211 : vector<24x96xi32>
    %213 = arith.cmpi eq, %208, %212 : vector<24x96xi32>
    %214 = arith.extui %213 : vector<24x96xi1> to vector<24x96xi32>
    %215 = arith.sitofp %214 : vector<24x96xi32> to vector<24x96xf32>
    %cst_89 = arith.constant dense<0.000000e+00> : vector<24x64xf32>
    %216 = tpu.matmul %215, %206, %cst_89 {dimension_numbers = #tpu.dot_dimension_numbers<[1], [0], [0], [1], [0, 0, 1, 1], [], []>} : vector<24x96xf32>, vector<96x64xf32>, vector<24x64xf32> -> vector<24x64xf32>
    %c0_90 = arith.constant 0 : index
    %c0_91 = arith.constant 0 : index
    %c0_92 = arith.constant 0 : index
    %217 = vector.load %arg8[%c0_90, %c0_91, %c0_92] : memref<2x64x64xf32, #tpu.memory_space<vmem>>, vector<1x64x64xf32>
    %218 = vector.shape_cast %217 : vector<1x64x64xf32> to vector<64x64xf32>
    %cst_93 = arith.constant dense<0.000000e+00> : vector<24x64xf32>
    %219 = tpu.matmul %216, %218, %cst_93 {dimension_numbers = #tpu.dot_dimension_numbers<[1], [0], [0], [1], [0, 0, 1, 1], [], []>} : vector<24x64xf32>, vector<64x64xf32>, vector<24x64xf32> -> vector<24x64xf32>
    %220 = tpu.iota {dimensions = array<i32: 0>} : vector<24x96xi32>
    %221 = tpu.iota {dimensions = array<i32: 1>} : vector<24x96xi32>
    %c4_i32_94 = arith.constant 4 : i32
    %222 = vector.broadcast %c4_i32_94 : i32 to vector<24x96xi32>
    %223 = arith.muli %220, %222 : vector<24x96xi32>
    %c1_i32_95 = arith.constant 1 : i32
    %224 = vector.broadcast %c1_i32_95 : i32 to vector<24x96xi32>
    %225 = arith.addi %223, %224 : vector<24x96xi32>
    %226 = arith.cmpi eq, %221, %225 : vector<24x96xi32>
    %227 = arith.extui %226 : vector<24x96xi1> to vector<24x96xi32>
    %228 = arith.sitofp %227 : vector<24x96xi32> to vector<24x96xf32>
    %cst_96 = arith.constant dense<0.000000e+00> : vector<24x64xf32>
    %229 = tpu.matmul %228, %206, %cst_96 {dimension_numbers = #tpu.dot_dimension_numbers<[1], [0], [0], [1], [0, 0, 1, 1], [], []>} : vector<24x96xf32>, vector<96x64xf32>, vector<24x64xf32> -> vector<24x64xf32>
    %c1_97 = arith.constant 1 : index
    %c0_98 = arith.constant 0 : index
    %c0_99 = arith.constant 0 : index
    %230 = vector.load %arg8[%c1_97, %c0_98, %c0_99] : memref<2x64x64xf32, #tpu.memory_space<vmem>>, vector<1x64x64xf32>
    %231 = vector.shape_cast %230 : vector<1x64x64xf32> to vector<64x64xf32>
    %cst_100 = arith.constant dense<0.000000e+00> : vector<24x64xf32>
    %232 = tpu.matmul %229, %231, %cst_100 {dimension_numbers = #tpu.dot_dimension_numbers<[1], [0], [0], [1], [0, 0, 1, 1], [], []>} : vector<24x64xf32>, vector<64x64xf32>, vector<24x64xf32> -> vector<24x64xf32>
    %233 = arith.addf %219, %232 : vector<24x64xf32>
    %c0_101 = arith.constant 0 : index
    %c0_102 = arith.constant 0 : index
    %234 = vector.load %arg9[%c0_101, %c0_102] : memref<1x64xf32, #tpu.memory_space<vmem>>, vector<1x64xf32>
    %235 = vector.broadcast %234 : vector<1x64xf32> to vector<24x64xf32>
    %236 = arith.addf %233, %235 : vector<24x64xf32>
    %cst_103 = arith.constant 0.000000e+00 : f32
    %237 = vector.broadcast %cst_103 : f32 to vector<24x64xf32>
    %238 = arith.maximumf %236, %237 : vector<24x64xf32>
    %c0_104 = arith.constant 0 : index
    %c0_105 = arith.constant 0 : index
    %c0_106 = arith.constant 0 : index
    %239 = vector.load %arg14[%c0_104, %c0_105, %c0_106] : memref<1x24x64xf32, #tpu.memory_space<vmem>>, vector<1x24x64xf32>
    %240 = vector.shape_cast %239 : vector<1x24x64xf32> to vector<24x64xf32>
    %241 = vector.shape_cast %238 : vector<24x64xf32> to vector<1x24x64xf32>
    tpu.vector_store %arg14[%c0_104, %c0_105, %c0_106], %241 {strides = array<i32>} : memref<1x24x64xf32, #tpu.memory_space<vmem>>, vector<1x24x64xf32>,
    return
  }
  func.func @transform_0(%arg0: i32) -> (i32, i32, i32) {
    %c0_i32 = arith.constant 0 : i32
    %c0_i32_0 = arith.constant 0 : i32
    %c0_i32_1 = arith.constant 0 : i32
    return %arg0, %c0_i32, %c0_i32_0 : i32, i32, i32
  }
  func.func @transform_1(%arg0: i32) -> (i32, i32) {
    %c0_i32 = arith.constant 0 : i32
    %c0_i32_0 = arith.constant 0 : i32
    %c0_i32_1 = arith.constant 0 : i32
    return %c0_i32, %c0_i32_0 : i32, i32
  }
  func.func @transform_2(%arg0: i32) -> (i32, i32) {
    %c0_i32 = arith.constant 0 : i32
    %c0_i32_0 = arith.constant 0 : i32
    %c0_i32_1 = arith.constant 0 : i32
    return %c0_i32, %c0_i32_0 : i32, i32
  }
  func.func @transform_3(%arg0: i32) -> (i32, i32, i32) {
    %c0_i32 = arith.constant 0 : i32
    %c0_i32_0 = arith.constant 0 : i32
    %c0_i32_1 = arith.constant 0 : i32
    %c0_i32_2 = arith.constant 0 : i32
    return %c0_i32, %c0_i32_0, %c0_i32_1 : i32, i32, i32
  }
  func.func @transform_4(%arg0: i32) -> (i32, i32) {
    %c0_i32 = arith.constant 0 : i32
    %c0_i32_0 = arith.constant 0 : i32
    %c0_i32_1 = arith.constant 0 : i32
    return %c0_i32, %c0_i32_0 : i32, i32
  }
  func.func @transform_5(%arg0: i32) -> (i32, i32, i32) {
    %c0_i32 = arith.constant 0 : i32
    %c0_i32_0 = arith.constant 0 : i32
    %c0_i32_1 = arith.constant 0 : i32
    %c0_i32_2 = arith.constant 0 : i32
    return %c0_i32, %c0_i32_0, %c0_i32_1 : i32, i32, i32
  }
  func.func @transform_6(%arg0: i32) -> (i32, i32) {
    %c0_i32 = arith.constant 0 : i32
    %c0_i32_0 = arith.constant 0 : i32
    %c0_i32_1 = arith.constant 0 : i32
    return %c0_i32, %c0_i32_0 : i32, i32
  }
  func.func @transform_7(%arg0: i32) -> (i32, i32, i32) {
    %c0_i32 = arith.constant 0 : i32
    %c0_i32_0 = arith.constant 0 : i32
    %c0_i32_1 = arith.constant 0 : i32
    %c0_i32_2 = arith.constant 0 : i32
    return %c0_i32, %c0_i32_0, %c0_i32_1 : i32, i32, i32
  }
  func.func @transform_8(%arg0: i32) -> (i32, i32) {
    %c0_i32 = arith.constant 0 : i32
    %c0_i32_0 = arith.constant 0 : i32
    %c0_i32_1 = arith.constant 0 : i32
    return %c0_i32, %c0_i32_0 : i32, i32
  }
  func.func @transform_9(%arg0: i32) -> (i32, i32, i32) {
    %c0_i32 = arith.constant 0 : i32
    %c0_i32_0 = arith.constant 0 : i32
    %c0_i32_1 = arith.constant 0 : i32
    return %arg0, %c0_i32, %c0_i32_0 : i32, i32, i32
  }
  func.func @transform_10(%arg0: i32) -> (i32, i32, i32) {
    %c0_i32 = arith.constant 0 : i32
    %c0_i32_0 = arith.constant 0 : i32
    %c0_i32_1 = arith.constant 0 : i32
    return %arg0, %c0_i32, %c0_i32_0 : i32, i32, i32
  }
  func.func @transform_11(%arg0: i32) -> (i32, i32, i32) {
    %c0_i32 = arith.constant 0 : i32
    %c0_i32_0 = arith.constant 0 : i32
    %c0_i32_1 = arith.constant 0 : i32
    return %arg0, %c0_i32, %c0_i32_0 : i32, i32, i32
  }
  func.func @transform_12(%arg0: i32) -> (i32, i32, i32) {
    %c0_i32 = arith.constant 0 : i32
    %c0_i32_0 = arith.constant 0 : i32
    %c0_i32_1 = arith.constant 0 : i32
    return %arg0, %c0_i32, %c0_i32_0 : i32, i32, i32
  }
  func.func @transform_13(%arg0: i32) -> (i32, i32, i32) {
    %c0_i32 = arith.constant 0 : i32
    %c0_i32_0 = arith.constant 0 : i32
    %c0_i32_1 = arith.constant 0 : i32
    return %arg0, %c0_i32, %c0_i32_0 : i32, i32, i32
  }
}

</mosaic_0001>

<bundles_post_ra>
// kernel: mid_mstm_icp.1
= control target key start
LH: loop header
LB: loop body
LE: loop exit
PB: predicated region body
PF: predicated region fallthrough
CT: control target
= control target key end

     0   :  { %s2423_s25 = smov 0   ;;  %s3291_s0 = inlined_call_operand.vmem [shape: f32[2,96,128], index: 0, kind: input, shape index: {}]   ;;  %s3292_s1 = inlined_call_operand.vmem [shape: f32[128,128], index: 1, kind: input, shape index: {}]   ;;  %s3293_s2 = inlined_call_operand.vmem [shape: f32[1,128], index: 2, kind: input, shape index: {}]   ;;  %s3294_s3 = inlined_call_operand.vmem [shape: f32[4,16,16], index: 3, kind: input, shape index: {}]   ;;  %s3295_s4 = inlined_call_operand.vmem [shape: f32[1,16], index: 4, kind: input, shape index: {}]   ;;  %s3296_s5 = inlined_call_operand.vmem [shape: f32[3,32,32], index: 5, kind: input, shape index: {}]   ;;  %s3297_s6 = inlined_call_operand.vmem [shape: f32[1,32], index: 6, kind: input, shape index: {}]   ;;  %s3298_s7 = inlined_call_operand.vmem [shape: f32[2,64,64], index: 7, kind: input, shape index: {}]   ;;  %s3299_s8 = inlined_call_operand.vmem [shape: f32[1,64], index: 8, kind: input, shape index: {}]   ;;  %s3300_s9 = inlined_call_operand.vmem [shape: f32[2,32,8], index: 9, kind: output, shape index: {0}]   ;;  %s3301_s10 = inlined_call_operand.vmem [shape: f32[2,31,8], index: 10, kind: output, shape index: {1}]   ;;  %s3302_s11 = inlined_call_operand.vmem [shape: f32[2,31,16], index: 11, kind: output, shape index: {2}]   ;;  %s3303_s12 = inlined_call_operand.vmem [shape: f32[2,32,32], index: 12, kind: output, shape index: {3}]   ;;  %s3304_s13 = inlined_call_operand.vmem [shape: f32[2,24,64], index: 13, kind: output, shape index: {4}]  }
   0x1 LB: > { %s2040_s26 = sadd.s32 4294967295, %s2346_s25   ;;  %p2044_p0 = scmp.ge.s32.totalorder %s2346_s25, 1  ;;  %s2346_s25 = sphi %s2423_s25, %s24_s25  }
   0x2   : > { %p396_p1 = scmp.lt.s32.totalorder %s2346_s25, 3 }
   0x4   : > { %p397_p2 = pnand %p2044_p0, %p396_p1 }
   0x5   : > { %p460_p3 = scmp.lt.s32.totalorder (!%p397_p2), %s2040_s26, 1  ;;  %s2348_s18 = smov (!%p397_p2), 120  }
   0x6   : > { %400 = sbr.rel (%p397_p2) target bundleno = 1086 (0x43e), region = 56  ;;  %s2349_s19 = smov (!%p397_p2), 112  }
   0x7   : > { %s2350_s20 = smov (!%p397_p2), 96  }
   0xb   : > { %v517_v0 = vld [vmem:[%s3292_s1 + $0x78] sm:$0xff]  ;;  %v516_v1 = vld [vmem:[%s3292_s1 + $0x70] sm:$0xff]  ;;  %v515_v2 = vld [vmem:[%s3292_s1 + $0x68] sm:$0xff]  ;;  %s3306_s26 = smov (!%p460_p3, %s2040_s26), 1  ;;  %vm610_vm1 = vcmask 785408  }
   0xc   : > { %522 = vmatpush.msra.mxu0 %v517_v0  ;;  %v514_v3 = vld [vmem:[%s3292_s1 + $0x60] sm:$0xff]  ;;  %v513_v4 = vld [vmem:[%s3292_s1 + $0x58] sm:$0xff]  ;;  %v512_v5 = vld [vmem:[%s3292_s1 + $0x50] sm:$0xff]  ;;  %s2201_s21 = smul.u32 96, %s3306_s26  ;;  %s2931_s15 = sshll.u32 %s3306_s26, 5 }
   0xd   : > { %v511_v6 = vld [vmem:[%s3292_s1 + $0x48] sm:$0xff]  ;;  %v510_v7 = vld [vmem:[%s3292_s1 + $0x40] sm:$0xff]  ;;  %v509_v8 = vld [vmem:[%s3292_s1 + $0x38] sm:$0xff]  ;;  %s2997_s27 = scalar_lea.vmem %s3301_s10, %s2931_s15  ;;  %s484_s28 = scalar_lea.vmem %s3303_s12, %s2931_s15 }
   0xe   : > { %523 = vmatpush.msra.mxu0 %v516_v1  ;;  %v508_v9 = vld [vmem:[%s3292_s1 + $0x30] sm:$0xff]  ;;  %v507_v10 = vld [vmem:[%s3292_s1 + $0x28] sm:$0xff]  ;;  %v506_v11 = vld [vmem:[%s3292_s1 + $0x20] sm:$0xff]  ;;  %s464_s30 = scalar_lea.vmem %s3291_s0, %s2201_s21  ;;  %s2351_s21 = smov 64  }
   0xf   : > { %v505_v12 = vld [vmem:[%s3292_s1 + $0x18] sm:$0xff]  ;;  %v504_v13 = vld [vmem:[%s3292_s1 + $0x10] sm:$0xff]  ;;  %v503_v14 = vld [vmem:[%s3292_s1 + $0x8] sm:$0xff] }
  0x10   : > { %524 = vmatpush.msra.mxu0 %v515_v2  ;;  %v502_v15 = vld [vmem:[%s3292_s1] sm:$0xff]  ;;  %v491_v17 = vld [vmem:[%s464_s30 + $0x8] sm:$0xff]  ;;  %v492_v18 = vld [vmem:[%s464_s30 + $0x10] sm:$0xff] }
  0x11   : > { %v490_v16 = vld [vmem:[%s464_s30] sm:$0xff]  ;;  %v493_v19 = vld [vmem:[%s464_s30 + $0x18] sm:$0xff]  ;;  %v495_v21 = vld [vmem:[%s464_s30 + $0x28] sm:$0xff] }
  0x12   : > { %525 = vmatpush.msra.mxu0 %v514_v3  ;;  %v494_v20 = vld [vmem:[%s464_s30 + $0x20] sm:$0xff]  ;;  %v496_v22 = vld [vmem:[%s464_s30 + $0x30] sm:$0xff]  ;;  %v497_v23 = vld [vmem:[%s464_s30 + $0x38] sm:$0xff] }
  0x13   : > { %v498_v24 = vld [vmem:[%s464_s30 + $0x40] sm:$0xff]  ;;  %v499_v25 = vld [vmem:[%s464_s30 + $0x48] sm:$0xff]  ;;  %v500_v26 = vld [vmem:[%s464_s30 + $0x50] sm:$0xff] }
  0x14   : > { %526 = vmatpush.msra.mxu0 %v513_v4  ;;  %v501_v27 = vld [vmem:[%s464_s30 + $0x58] sm:$0xff]  ;;  %v2336_v31 = vld [vmem:[%s3293_s2] ss:$0 sm:$0xff]  ;;  %s2202_s30 = smul.u32 24, %s3306_s26 }
  0x16   : > { %527 = vmatpush.msra.mxu0 %v512_v5  ;;  %s489_s17 = scalar_lea.vmem %s3304_s13, %s2202_s30 }
  0x18   : > { %528 = vmatpush.msra.mxu0 %v511_v6 }
  0x1a   : > { %529 = vmatpush.msra.mxu0 %v510_v7  ;;  %v587_v7 = vlaneseq }
  0x1c   : > { %530 = vmatpush.msra.mxu0 %v509_v8  ;;  %v2554_v8 = vshrl.u32 %v587_v7, 7 }
  0x1e   : > { %531 = vmatpush.msra.mxu0 %v508_v9  ;;  %v2556_v9 = vand.u32 127, %v587_v7 }
  0x20   : > { %532 = vmatpush.msra.mxu0 %v507_v10  ;;  %v2559_v10 = vmul.u32 3, %v2554_v8 }
  0x22   : > { %533 = vmatpush.msra.mxu0 %v506_v11  ;;  %vm598_vm0 = vcmp.eq.s32.totalorder %v2556_v9, %v2559_v10  ;;  %v713_v11 = vadd.s32 2, %v2559_v10 }
  0x24   : > { %534 = vmatpush.msra.mxu0 %v505_v12  ;;  %v652_v12 = vadd.s32 1, %v2559_v10  ;;  %vm717_vm2 = vcmp.eq.s32.totalorder %v2556_v9, %v713_v11 }
  0x26   : > { %535 = vmatpush.msra.mxu0 %v504_v13  ;;  %v2352_v13 = vmov 0.0   ;;  %vm656_vm3 = vcmp.eq.s32.totalorder %v2556_v9, %v652_v12 }
  0x28   : > { %536 = vmatpush.msra.mxu0 %v503_v14  ;;  %v2566_v14 = vsel %vm598_vm0, 1.0, %v2352_v13 }
  0x2a   : > { %537 = vmatpush.msra.mxu0 %v502_v15  ;;  %v2573_v15 = vsel %vm717_vm2, 1.0, %v2352_v13  ;;  %vm774_vm2 = vcmask 64512  }
  0x2b   : > { %538 = vmatmul.f32.vlgmr.msra.gmra.mxu0 %v490_v16  ;;  %v2576_v16 = vsel %vm656_vm3, 1.0, %v2352_v13  ;;  %vm1087_vm3 = vcmask 130048  }
  0x33   : > { %541 = vmatmul.f32.gmra.mxu0 %v491_v17  ;;  %v2583_v17 = vadd.s32 8, %v2554_v8 }
  0x3b   : > { %544 = vmatmul.f32.gmra.mxu0 %v492_v18  ;;  %v2586_v18 = vmul.u32 3, %v2583_v17 }
  0x3d   : > { %vm599_vm4 = vcmp.eq.s32.totalorder %v2556_v9, %v2586_v18 }
  0x43   : > { %547 = vmatmul.f32.gmra.mxu0 %v493_v19  ;;  %v653_v19 = vadd.s32 1, %v2586_v18 }
  0x45   : > { %vm657_vm5 = vcmp.eq.s32.totalorder %v2556_v9, %v653_v19 }
  0x4b   : > { %550 = vmatmul.f32.gmra.mxu0 %v494_v20  ;;  %v714_v20 = vadd.s32 2, %v2586_v18 }
  0x4d   : > { %vm718_vm6 = vcmp.eq.s32.totalorder %v2556_v9, %v714_v20 }
  0x53   : > { %553 = vmatmul.f32.gmra.mxu0 %v495_v21  ;;  %v2594_v21 = vsel %vm599_vm4, 1.0, %v2352_v13  ;;  %vm986_vm4 = vcmask 63488  }
  0x5b   : > { %556 = vmatmul.f32.gmra.mxu0 %v496_v22  ;;  %v2598_v22 = vsel %vm657_vm5, 1.0, %v2352_v13  ;;  %vm1444_vm5 = vcmask 261120  }
  0x63   : > { %559 = vmatmul.f32.gmra.mxu0 %v497_v23  ;;  %v2601_v23 = vadd.s32 16, %v2554_v8 }
  0x6b   : > { %562 = vmatmul.f32.gmra.mxu0 %v498_v24  ;;  %v2606_v24 = vsel %vm718_vm6, 1.0, %v2352_v13 }
  0x73   : > { %565 = vmatmul.f32.gmra.mxu0 %v499_v25  ;;  %v2613_v25 = vmul.u32 3, %v2601_v23 }
  0x75   : > { %vm600_vm8 = vcmp.eq.s32.totalorder %v2556_v9, %v2613_v25 }
  0x7b   : > { %568 = vmatmul.f32.gmra.mxu0 %v500_v26  ;;  %v654_v26 = vadd.s32 1, %v2613_v25 }
  0x7d   : > { %vm658_vm7 = vcmp.eq.s32.totalorder %v2556_v9, %v654_v26 }
  0x83   : > { %571 = vmatmul.f32.gmra.mxu0 %v501_v27  ;;  %v715_v27 = vadd.s32 2, %v2613_v25 }
  0x85   : > { %vm719_vm9 = vcmp.eq.s32.totalorder %v2556_v9, %v715_v27 }
  0xa8   : > { %v539_v28 = vpop.f32.mrf.mxu0 }
  0xa9   : > { %v540_v39 = vadd.f32 %v2336_v31, %v539_v28  ;;  %v2621_v28 = vsel %vm658_vm7, 1.0, %v2352_v13 }
  0xab   : > { %v2500_v42 = vmax.f32 %v540_v39, 0.0 }
  0xb0   : > { %v542_v29 = vpop.f32.mrf.mxu0 }
  0xb1   : > { %v543_v37 = vadd.f32 %v2336_v31, %v542_v29  ;;  %v2624_v29 = vsel %vm600_vm8, 1.0, %v2352_v13 }
  0xb3   : > { %v2498_v41 = vmax.f32 %v543_v37, 0.0 }
  0xb5   : > { %v2241_v43 = vpack.i.bf16 %v2500_v42, %v2498_v41 }
  0xb8   : > { %v545_v30 = vpop.f32.mrf.mxu0 }
  0xb9   : > { %v546_v32 = vadd.f32 %v2336_v31, %v545_v30  ;;  %v591_v30 = vadd.s32 24, %v2554_v8 }
  0xbb   : > { %v2488_v35 = vmax.f32 %v546_v32, 0.0  ;;  %v2637_v32 = vmul.u32 3, %v591_v30 }
  0xbd   : > { %vm601_vm11 = vcmp.eq.s32.totalorder %v2556_v9, %v2637_v32 }
  0xc0   : > { %v548_v33 = vpop.f32.mrf.mxu0 }
  0xc1   : > { %v549_v34 = vadd.f32 %v2336_v31, %v548_v33  ;;  %v655_v33 = vadd.s32 1, %v2637_v32 }
  0xc3   : > { %v2490_v36 = vmax.f32 %v549_v34, 0.0  ;;  %v716_v34 = vadd.s32 2, %v2637_v32  ;;  %vm659_vm10 = vcmp.eq.s32.totalorder %v2556_v9, %v655_v33 }
  0xc5   : > { %v2494_v38 = vpack.i.bf16 %v2488_v35, %v2490_v36  ;;  %vm720_vm12 = vcmp.eq.s32.totalorder %v2556_v9, %v716_v34 }
  0xc6   : > { %v2654_v37 = vsel %vm720_vm12, 1.0, %v2352_v13  ;;  %vm1769_vm12 = vcmask 523264  }
  0xc7   : > { %2237 = vrot.lane.b32.xlu2 %v2494_v38, %s2348_s18 }
  0xc8   : > { %v551_v40 = vpop.f32.mrf.mxu0 }
  0xc9   : > { %v552_v44 = vadd.f32 %v2336_v31, %v551_v40 }
  0xcb   : > { %v2505_v47 = vmax.f32 %v552_v44, 0.0  ;;  %v2121_v44 = vld [vmem:[%s3294_s3 + $0x20] sm:$0xff] }
  0xcf   : > { %2242 = vrot.lane.b32.xlu2 %v2241_v43, %s2348_s18 }
  0xd0   : > { %v554_v45 = vpop.f32.mrf.mxu0 }
  0xd1   : > { %v555_v46 = vadd.f32 %v2336_v31, %v554_v45 }
  0xd3   : > { %v580_v48 = vmax.f32 %v555_v46, 0.0 }
  0xd5   : > { %v2508_v49 = vpack.i.bf16 %v2505_v47, %v580_v48 }
  0xd8   : > { %v557_v50 = vpop.f32.mrf.mxu0 }
  0xd9   : > { %v558_v51 = vadd.f32 %v2336_v31, %v557_v50 }
  0xdb   : > { %v581_v54 = vmax.f32 %v558_v51, 0.0 }
  0xe0   : > { %v560_v52 = vpop.f32.mrf.mxu0 }
  0xe1   : > { %v561_v53 = vadd.f32 %v2336_v31, %v560_v52 }
  0xe3   : > { %v582_v55 = vmax.f32 %v561_v53, 0.0 }
  0xe5   : > { %v2226_v56 = vpack.i.bf16 %v581_v54, %v582_v55 }
  0xe7   : > { %2227 = vrot.lane.b32.xlu1 %v2226_v56, %s2348_s18  ;;  %2257 = vrot.lane.b32.xlu2 %v2226_v56, %s2349_s19 }
  0xe8   : > { %v563_v57 = vpop.f32.mrf.mxu0 }
  0xe9   : > { %v564_v58 = vadd.f32 %v2336_v31, %v563_v57 }
  0xeb   : > { %v583_v61 = vmax.f32 %v564_v58, 0.0 }
  0xef   : > { %2232 = vrot.lane.b32.xlu1 %v2508_v49, %s2348_s18  ;;  %2272 = vrot.lane.b32.xlu2 %v2241_v43, %s2349_s19 }
  0xf0   : > { %v566_v59 = vpop.f32.mrf.mxu0 }
  0xf1   : > { %v567_v60 = vadd.f32 %v2336_v31, %v566_v59 }
  0xf3   : > { %v584_v62 = vmax.f32 %v567_v60, 0.0 }
  0xf5   : > { %v2251_v63 = vpack.i.bf16 %v583_v61, %v584_v62 }
  0xf7   : > { %2252 = vrot.lane.b32.xlu1 %v2251_v63, %s2349_s19  ;;  %2287 = vrot.lane.b32.xlu2 %v2226_v56, %s2350_s20 }
  0xf8   : > { %v569_v0 = vpop.f32.mrf.mxu0 }
  0xf9   : > { %v570_v1 = vadd.f32 %v2336_v31, %v569_v0 }
  0xfb   : > { %v585_v4 = vmax.f32 %v570_v1, 0.0 }
  0xff   : > { %2267 = vrot.lane.b32.xlu1 %v2494_v38, %s2349_s19  ;;  %2302 = vrot.lane.b32.xlu2 %v2241_v43, %s2350_s20 }
 0x100   : > { %v572_v2 = vpop.f32.mrf.mxu0 }
 0x101   : > { %v573_v3 = vadd.f32 %v2336_v31, %v572_v2  ;;  %v2631_v31 = vsel %vm719_vm9, 1.0, %v2352_v13 }
 0x103   : > { %v586_v5 = vmax.f32 %v573_v3, 0.0 }
 0x105   : > { %627 = vmatpush.msra.mxu1 %v586_v5  ;;  %684 = vmatpush.msra.mxu2 %v586_v5  ;;  %v2216_v6 = vpack.i.bf16 %v585_v4, %v586_v5 }
 0x106   : > { %745 = vmatpush.msra.mxu3 %v586_v5 }
 0x107   : > { %2217 = vrot.lane.b32.xlu0 %v2216_v6, %s2348_s18  ;;  %628 = vmatpush.msra.mxu1 %v585_v4 }
 0x108   : > { %685 = vmatpush.msra.mxu2 %v585_v4  ;;  %746 = vmatpush.msra.mxu3 %v585_v4 }
 0x109   : > { %2282 = vrot.lane.b32.xlu1 %v2251_v63, %s2350_s20  ;;  %2317 = vrot.lane.b32.xlu2 %v2226_v56, %s2351_s21 }
 0x10a   : > { %629 = vmatpush.msra.mxu1 %v584_v62  ;;  %686 = vmatpush.msra.mxu2 %v584_v62 }
 0x10b   : > { %747 = vmatpush.msra.mxu3 %v584_v62 }
 0x10c   : > { %630 = vmatpush.msra.mxu1 %v583_v61  ;;  %687 = vmatpush.msra.mxu2 %v583_v61 }
 0x10d   : > { %748 = vmatpush.msra.mxu3 %v583_v61 }
 0x10e   : > { %631 = vmatpush.msra.mxu1 %v582_v55  ;;  %688 = vmatpush.msra.mxu2 %v582_v55 }
 0x10f   : > { %749 = vmatpush.msra.mxu3 %v582_v55  ;;  %2222 = vrot.lane.b32.xlu0 %v2251_v63, %s2348_s18  ;;  %s2940_s18 = scalar_lea.vmem %s3300_s9, %s2931_s15 }
 0x110   : > { %632 = vmatpush.msra.mxu1 %v581_v54  ;;  %689 = vmatpush.msra.mxu2 %v581_v54 }
 0x111   : > { %750 = vmatpush.msra.mxu3 %v581_v54  ;;  %2297 = vrot.lane.b32.xlu1 %v2494_v38, %s2350_s20 }
 0x112   : > { %2332 = vrot.lane.b32.xlu2 %v2241_v43, %s2351_s21  ;;  %633 = vmatpush.msra.mxu1 %v580_v48 }
 0x113   : > { %690 = vmatpush.msra.mxu2 %v580_v48  ;;  %751 = vmatpush.msra.mxu3 %v580_v48 }
 0x114   : > { %634 = vmatpush.msra.mxu1 %v2505_v47 }
 0x115   : > { %691 = vmatpush.msra.mxu2 %v2505_v47  ;;  %752 = vmatpush.msra.mxu3 %v2505_v47 }
 0x116   : > { %635 = vmatpush.msra.mxu1 %v2490_v36 }
 0x117   : > { %692 = vmatpush.msra.mxu2 %v2490_v36  ;;  %753 = vmatpush.msra.mxu3 %v2490_v36  ;;  %v2648_v36 = vsel %vm601_vm11, 1.0, %v2352_v13 }
 0x118   : > { %2247 = vrot.lane.b32.xlu0 %v2216_v6, %s2349_s19  ;;  %636 = vmatpush.msra.mxu1 %v2488_v35 }
 0x119   : > { %2312 = vrot.lane.b32.xlu1 %v2251_v63, %s2351_s21  ;;  %693 = vmatpush.msra.mxu2 %v2488_v35 }
 0x11a   : > { %754 = vmatpush.msra.mxu3 %v2488_v35  ;;  %637 = vmatpush.msra.mxu1 %v2498_v41  ;;  %v2645_v35 = vsel %vm659_vm10, 1.0, %v2352_v13 }
 0x11b   : > { %694 = vmatpush.msra.mxu2 %v2498_v41 }
 0x11c   : > { %755 = vmatpush.msra.mxu3 %v2498_v41  ;;  %638 = vmatpush.msra.mxu1 %v2500_v42  ;;  %v2122_v41 = vld [vmem:[%s3294_s3 + $0x28] sm:$0xff] }
 0x11d   : > { %695 = vmatpush.msra.mxu2 %v2500_v42  ;;  %2059 = vmatmul.msk.f32.vlgmr.msra.gmra.mxu1 %vm610_vm1, %v2566_v14 }
 0x11e   : > { %756 = vmatpush.msra.mxu3 %v2500_v42  ;;  %2067 = vmatmul.msk.f32.vlgmr.msra.gmra.mxu2 %vm610_vm1, %v2576_v16 }
 0x11f   : > { %2075 = vmatmul.msk.f32.vlgmr.msra.gmra.mxu3 %vm610_vm1, %v2573_v15  ;;  %1228 = vmatpush.msrb.mxu0 %v2122_v41 }
 0x120   : > { %2262 = vrot.lane.b32.xlu0 %v2508_v49, %s2349_s19 }
 0x121   : > { %2327 = vrot.lane.b32.xlu1 %v2494_v38, %s2351_s21  ;;  %v2238_v42 = vpop.permute.xlu2 %2237  ;;  %1229 = vmatpush.msrb.mxu0 %v2121_v44 }
 0x122   : > { %v2698_v56 = vunpack.i.l.bf16 %v2238_v42  ;;  %v2703_v58 = vunpack.i.h.bf16 %v2238_v42 }
 0x125   : > { %2060 = vmatmul.msk.f32.gmra.mxu1 %vm610_vm1, %v2594_v21 }
 0x126   : > { %2068 = vmatmul.msk.f32.gmra.mxu2 %vm610_vm1, %v2598_v22 }
 0x127   : > { %2076 = vmatmul.msk.f32.gmra.mxu3 %vm610_vm1, %v2606_v24 }
 0x128   : > { %2277 = vrot.lane.b32.xlu0 %v2216_v6, %s2350_s20 }
 0x12d   : > { %2061 = vmatmul.msk.f32.gmra.mxu1 %vm610_vm1, %v2624_v29 }
 0x12e   : > { %2069 = vmatmul.msk.f32.gmra.mxu2 %vm610_vm1, %v2621_v28 }
 0x12f   : > { %2077 = vmatmul.msk.f32.gmra.mxu3 %vm610_vm1, %v2631_v31 }
 0x130   : > { %2292 = vrot.lane.b32.xlu0 %v2508_v49, %s2350_s20 }
 0x135   : > { %2062 = vmatmul.msk.f32.gmra.mxu1 %vm610_vm1, %v2648_v36 }
 0x136   : > { %2070 = vmatmul.msk.f32.gmra.mxu2 %vm610_vm1, %v2645_v35 }
 0x137   : > { %2078 = vmatmul.msk.f32.gmra.mxu3 %vm610_vm1, %v2654_v37 }
 0x138   : > { %2307 = vrot.lane.b32.xlu0 %v2216_v6, %s2351_s21 }
 0x140   : > { %2322 = vrot.lane.b32.xlu0 %v2508_v49, %s2351_s21  ;;  %v2243_v49 = vpop.permute.xlu2 %2242 }
 0x141   : > { %v2708_v59 = vunpack.i.l.bf16 %v2243_v49  ;;  %v2713_v61 = vunpack.i.h.bf16 %v2243_v49  ;;  %v922_v49 = vadd.s32 3, %v2559_v10  ;;  %v2107_v10 = vld [vmem:[%s3294_s3 + $0x10] sm:$0xff] }
 0x143   : > { %vm926_vm13 = vcmp.eq.s32.totalorder %v2556_v9, %v922_v49  ;;  %v2147_v49 = vld [vmem:[%s3296_s5 + $0x30] sm:$0xff] }
 0x148   : > { %v2258_v57 = vpop.permute.xlu2 %2257 }
 0x149   : > { %v2755_v11 = vunpack.i.l.bf16 %v2258_v57  ;;  %v2765_v19 = vunpack.i.h.bf16 %v2258_v57 }
 0x150   : > { %v2727_v0 = vpop.permute.xlu2 %2272 }
 0x151   : > { %v2816_v44 = vunpack.i.l.bf16 %v2727_v0 }
 0x158   : > { %v2288_v20 = vpop.permute.xlu2 %2287 }
 0x159   : > { %v2228_v38 = vpop.permute.xlu1 %2227  ;;  %v2778_v30 = vunpack.i.l.bf16 %v2288_v20  ;;  %v2786_v34 = vunpack.i.h.bf16 %v2288_v20 }
 0x15a   : > { %v2678_v50 = vunpack.i.l.bf16 %v2228_v38  ;;  %v2683_v51 = vunpack.i.h.bf16 %v2228_v38 }
 0x161   : > { %v2233_v45 = vpop.permute.xlu1 %2232 }
 0x162   : > { %v2688_v52 = vunpack.i.l.bf16 %v2233_v45  ;;  %v2693_v55 = vunpack.i.h.bf16 %v2233_v45 }
 0x169   : > { %v2253_v53 = vpop.permute.xlu1 %2252 }
 0x16a   : > { %v2739_v3 = vunpack.i.l.bf16 %v2253_v53  ;;  %v2745_v5 = vunpack.i.h.bf16 %v2253_v53  ;;  %v2861_v53 = vsel %vm926_vm13, 1.0, %v2352_v13 }
 0x171   : > { %v2715_v62 = vpop.permute.xlu1 %2267 }
 0x172   : > { %v2806_v41 = vunpack.i.h.bf16 %v2715_v62 }
 0x179   : > { %v2218_v39 = vpop.permute.xlu0 %2217 }
 0x17a   : > { %v2660_v40 = vunpack.i.l.bf16 %v2218_v39  ;;  %v2665_v43 = vunpack.i.h.bf16 %v2218_v39  ;;  %v2793_v39 = vunpack.i.l.bf16 %v2715_v62 }
 0x17b   : > { %v2283_v6 = vpop.permute.xlu1 %2282 }
 0x17c   : > { %831 = vmatpush.msrb.mxu1 %v2660_v40  ;;  %860 = vmatpush.msrb.mxu2 %v2660_v40  ;;  %v2760_v12 = vunpack.i.l.bf16 %v2283_v6  ;;  %v2769_v26 = vunpack.i.h.bf16 %v2283_v6 }
 0x17d   : > { %893 = vmatpush.msrb.mxu3 %v2660_v40 }
 0x17e   : > { %832 = vmatpush.msrb.mxu1 %v2665_v43  ;;  %861 = vmatpush.msrb.mxu2 %v2665_v43 }
 0x17f   : > { %894 = vmatpush.msrb.mxu3 %v2665_v43 }
 0x181   : > { %v2223_v46 = vpop.permute.xlu0 %2222 }
 0x182   : > { %v2224_v47 = vunpack.i.l.bf16 %v2223_v46  ;;  %v2676_v48 = vunpack.i.h.bf16 %v2223_v46  ;;  %v2825_v46 = vunpack.i.h.bf16 %v2727_v0 }
 0x183   : > { %v2298_v42 = vpop.permute.xlu1 %2297 }
 0x184   : > { %833 = vmatpush.msrb.mxu1 %v2224_v47  ;;  %862 = vmatpush.msrb.mxu2 %v2224_v47  ;;  %v2820_v45 = vunpack.i.l.bf16 %v2298_v42 }
 0x185   : > { %895 = vmatpush.msrb.mxu3 %v2224_v47 }
 0x186   : > { %834 = vmatpush.msrb.mxu1 %v2676_v48  ;;  %863 = vmatpush.msrb.mxu2 %v2676_v48 }
 0x187   : > { %896 = vmatpush.msrb.mxu3 %v2676_v48 }
 0x188   : > { %835 = vmatpush.msrb.mxu1 %v2678_v50  ;;  %864 = vmatpush.msrb.mxu2 %v2678_v50 }
 0x189   : > { %897 = vmatpush.msrb.mxu3 %v2678_v50 }
 0x18a   : > { %v2248_v54 = vpop.permute.xlu0 %2247  ;;  %836 = vmatpush.msrb.mxu1 %v2683_v51  ;;  %865 = vmatpush.msrb.mxu2 %v2683_v51 }
 0x18b   : > { %898 = vmatpush.msrb.mxu3 %v2683_v51  ;;  %v2722_v63 = vunpack.i.l.bf16 %v2248_v54  ;;  %v2732_v1 = vunpack.i.h.bf16 %v2248_v54  ;;  %v923_v54 = vadd.s32 3, %v2586_v18 }
 0x18c   : > { %837 = vmatpush.msrb.mxu1 %v2688_v52  ;;  %866 = vmatpush.msrb.mxu2 %v2688_v52 }
 0x18d   : > { %899 = vmatpush.msrb.mxu3 %v2688_v52  ;;  %vm927_vm14 = vcmp.eq.s32.totalorder %v2556_v9, %v923_v54  ;;  %v2145_v54 = vld [vmem:[%s3296_s5 + $0x20] sm:$0xff] }
 0x18e   : > { %838 = vmatpush.msrb.mxu1 %v2693_v55  ;;  %867 = vmatpush.msrb.mxu2 %v2693_v55  ;;  %v2878_v18 = vsel %vm927_vm14, 1.0, %v2352_v13 }
 0x18f   : > { %900 = vmatpush.msrb.mxu3 %v2693_v55 }
 0x190   : > { %839 = vmatpush.msrb.mxu1 %v2698_v56  ;;  %868 = vmatpush.msrb.mxu2 %v2698_v56 }
 0x191   : > { %901 = vmatpush.msrb.mxu3 %v2698_v56 }
 0x192   : > { %v2263_v60 = vpop.permute.xlu0 %2262  ;;  %840 = vmatpush.msrb.mxu1 %v2703_v58  ;;  %869 = vmatpush.msrb.mxu2 %v2703_v58 }
 0x193   : > { %902 = vmatpush.msrb.mxu3 %v2703_v58  ;;  %v2774_v27 = vunpack.i.l.bf16 %v2263_v60  ;;  %v2782_v33 = vunpack.i.h.bf16 %v2263_v60 }
 0x194   : > { %841 = vmatpush.msrb.mxu1 %v2708_v59  ;;  %870 = vmatpush.msrb.mxu2 %v2708_v59 }
 0x195   : > { %903 = vmatpush.msrb.mxu3 %v2708_v59 }
 0x196   : > { %842 = vmatpush.msrb.mxu1 %v2713_v61  ;;  %871 = vmatpush.msrb.mxu2 %v2713_v61 }
 0x197   : > { %904 = vmatpush.msrb.mxu3 %v2713_v61  ;;  %2079 = vmatmul.msk.f32.vlgmr.msrb.gmra.mxu1 %vm610_vm1, %v2566_v14 }
 0x198   : > { %2087 = vmatmul.msk.f32.vlgmr.msrb.gmra.mxu3 %vm610_vm1, %v2573_v15  ;;  %954 = vmatpush.msra.mxu1 %v2660_v40 }
 0x199   : > { %1028 = vmatpush.msra.mxu2 %v2722_v63  ;;  %1059 = vmatpush.msra.mxu3 %v2722_v63 }
 0x19a   : > { %2083 = vmatmul.msk.f32.vlgmr.msrb.gmra.mxu2 %vm610_vm1, %v2576_v16  ;;  %v2278_v2 = vpop.permute.xlu0 %2277  ;;  %955 = vmatpush.msra.mxu1 %v2665_v43  ;;  %v640_v57 = vpop.f32.mrf.mxu1 }
 0x19b   : > { %v2741_v4 = vunpack.i.l.bf16 %v2278_v2  ;;  %1029 = vmatpush.msra.mxu2 %v2732_v1  ;;  %1060 = vmatpush.msra.mxu3 %v2732_v1  ;;  %v2749_v7 = vunpack.i.h.bf16 %v2278_v2 }
 0x19c   : > { %956 = vmatpush.msra.mxu1 %v2224_v47  ;;  %v2303_v47 = vpop.permute.xlu2 %2302 }
 0x19d   : > { %1030 = vmatpush.msra.mxu2 %v2739_v3  ;;  %1061 = vmatpush.msra.mxu3 %v2739_v3 }
 0x19e   : > { %1414 = vmatpush.msra.mxu0 %v2741_v4  ;;  %957 = vmatpush.msra.mxu1 %v2676_v48  ;;  %v2829_v48 = vunpack.i.h.bf16 %v2298_v42 }
 0x19f   : > { %1031 = vmatpush.msra.mxu2 %v2745_v5  ;;  %1062 = vmatpush.msra.mxu3 %v2745_v5 }
 0x1a0   : > { %1415 = vmatpush.msra.mxu0 %v2749_v7  ;;  %2080 = vmatmul.msk.f32.gmra.mxu1 %vm610_vm1, %v2594_v21 }
 0x1a1   : > { %2088 = vmatmul.msk.f32.gmra.mxu3 %vm610_vm1, %v2606_v24  ;;  %958 = vmatpush.msra.mxu1 %v2678_v50  ;;  %v2108_v50 = vld [vmem:[%s3294_s3 + $0x18] sm:$0xff] }
 0x1a2   : > { %1032 = vmatpush.msra.mxu2 %v2755_v11  ;;  %1063 = vmatpush.msra.mxu3 %v2755_v11  ;;  %v2293_v38 = vpop.permute.xlu0 %2292  ;;  %v643_v62 = vpop.f32.mrf.mxu1 }
 0x1a3   : > { %2084 = vmatmul.msk.f32.gmra.mxu2 %vm610_vm1, %v2598_v22  ;;  %1416 = vmatpush.msra.mxu0 %v2760_v12  ;;  %v2801_v40 = vunpack.i.l.bf16 %v2293_v38  ;;  %v2811_v43 = vunpack.i.h.bf16 %v2293_v38 }
 0x1a4   : > { %959 = vmatpush.msra.mxu1 %v2683_v51  ;;  %1033 = vmatpush.msra.mxu2 %v2765_v19  ;;  %v2841_v51 = vunpack.i.l.bf16 %v2303_v47 }
 0x1a5   : > { %1064 = vmatpush.msra.mxu3 %v2765_v19  ;;  %1417 = vmatpush.msra.mxu0 %v2769_v26 }
 0x1a6   : > { %960 = vmatpush.msra.mxu1 %v2688_v52  ;;  %1034 = vmatpush.msra.mxu2 %v2774_v27  ;;  %v2853_v52 = vunpack.i.h.bf16 %v2303_v47 }
 0x1a7   : > { %1065 = vmatpush.msra.mxu3 %v2774_v27  ;;  %1418 = vmatpush.msra.mxu0 %v2778_v30 }
 0x1a8   : > { %961 = vmatpush.msra.mxu1 %v2693_v55  ;;  %1035 = vmatpush.msra.mxu2 %v2782_v33  ;;  %v924_v55 = vadd.s32 3, %v2613_v25 }
 0x1a9   : > { %1066 = vmatpush.msra.mxu3 %v2782_v33  ;;  %1419 = vmatpush.msra.mxu0 %v2786_v34 }
 0x1aa   : > { %2081 = vmatmul.msk.f32.gmra.mxu1 %vm610_vm1, %v2624_v29  ;;  %2089 = vmatmul.msk.f32.gmra.mxu3 %vm610_vm1, %v2631_v31  ;;  %vm928_vm15 = vcmp.eq.s32.totalorder %v2556_v9, %v924_v55 }
 0x1ab   : > { %962 = vmatpush.msra.mxu1 %v2698_v56  ;;  %1036 = vmatpush.msra.mxu2 %v2793_v39  ;;  %v2897_v25 = vsel %vm928_vm15, 1.0, %v2352_v13  ;;  %v925_v56 = vadd.s32 3, %v2637_v32 }
 0x1ac   : > { %1067 = vmatpush.msra.mxu3 %v2793_v39  ;;  %2085 = vmatmul.msk.f32.gmra.mxu2 %vm610_vm1, %v2621_v28 }
 0x1ad   : > { %1420 = vmatpush.msra.mxu0 %v2801_v40  ;;  %963 = vmatpush.msra.mxu1 %v2703_v58  ;;  %vm929_vm0 = vcmp.eq.s32.totalorder %v2556_v9, %v925_v56  ;;  %v758_v58 = vpop.f32.mrf.mxu3 }
 0x1ae   : > { %1037 = vmatpush.msra.mxu2 %v2806_v41  ;;  %1068 = vmatpush.msra.mxu3 %v2806_v41  ;;  %v2916_v32 = vsel %vm929_vm0, 1.0, %v2352_v13 }
 0x1af   : > { %1421 = vmatpush.msra.mxu0 %v2811_v43  ;;  %964 = vmatpush.msra.mxu1 %v2708_v59  ;;  %v697_v59 = vpop.f32.mrf.mxu2 }
 0x1b0   : > { %1038 = vmatpush.msra.mxu2 %v2816_v44  ;;  %1069 = vmatpush.msra.mxu3 %v2816_v44  ;;  %v709_v60 = vmax.f32 %v640_v57, %v697_v59 }
 0x1b1   : > { %1422 = vmatpush.msra.mxu0 %v2820_v45  ;;  %965 = vmatpush.msra.mxu1 %v2713_v61 }
 0x1b2   : > { %1039 = vmatpush.msra.mxu2 %v2825_v46  ;;  %1070 = vmatpush.msra.mxu3 %v2825_v46  ;;  %v770_v61 = vmax.f32 %v709_v60, %v758_v58 }
 0x1b3   : > { %1423 = vmatpush.msra.mxu0 %v2829_v48  ;;  %2082 = vmatmul.msk.f32.gmra.mxu1 %vm610_vm1, %v2648_v36 }
 0x1b4   : > { %1174 = vmatpush.msrb.mxu3 %v2722_v63  ;;  %2086 = vmatmul.msk.f32.gmra.mxu2 %vm610_vm1, %v2645_v35  ;;  %775 = vst.msk [vmem:[%s2940_s18] sm:$0xff] %vm774_vm2, %v770_v61 }
 0x1b5   : > { %2090 = vmatmul.msk.f32.gmra.mxu3 %vm610_vm1, %v2654_v37  ;;  %1424 = vmatpush.msra.mxu0 %v2841_v51  ;;  %v761_v0 = vpop.f32.mrf.mxu3 }
 0x1b6   : > { %1175 = vmatpush.msrb.mxu3 %v2732_v1  ;;  %1114 = vmatpush.msrb.mxu1 %v2108_v50 }
 0x1b7   : > { %1425 = vmatpush.msra.mxu0 %v2853_v52 }
 0x1b8   : > { %1176 = vmatpush.msrb.mxu3 %v2739_v3  ;;  %1115 = vmatpush.msrb.mxu1 %v2107_v10  ;;  %v2146_v10 = vld [vmem:[%s3296_s5 + $0x28] sm:$0xff] }
 0x1ba   : > { %1177 = vmatpush.msrb.mxu3 %v2745_v5 }
 0x1bb   : > { %2095 = vmatmul.msk.f32.vlgmr.msra.gmra.mxu1 %vm610_vm1, %v2861_v53 }
 0x1bc   : > { %1178 = vmatpush.msrb.mxu3 %v2755_v11  ;;  %1251 = vmatpush.msra.mxu1 %v2722_v63  ;;  %v700_v63 = vpop.f32.mrf.mxu2 }
 0x1bd   : > { %2103 = vmatmul.msk.f32.vlgmr.msra.gmra.mxu3 %vm610_vm1, %v2576_v16  ;;  %2099 = vmatmul.msk.f32.vlgmr.msra.gmra.mxu2 %vm610_vm1, %v2566_v14 }
 0x1be   : > { %1179 = vmatpush.msrb.mxu3 %v2765_v19  ;;  %1252 = vmatpush.msra.mxu1 %v2732_v1  ;;  %v710_v1 = vmax.f32 %v643_v62, %v700_v63 }
 0x1c0   : > { %1180 = vmatpush.msrb.mxu3 %v2774_v27  ;;  %1253 = vmatpush.msra.mxu1 %v2739_v3  ;;  %v771_v2 = vmax.f32 %v710_v1, %v761_v0  ;;  %v646_v3 = vpop.f32.mrf.mxu1 }
 0x1c2   : > { %1181 = vmatpush.msrb.mxu3 %v2782_v33  ;;  %1254 = vmatpush.msra.mxu1 %v2745_v5  ;;  %776 = vst.msk [vmem:[%s2940_s18 + $0x8] sm:$0xff] %vm774_vm2, %v771_v2  ;;  %v764_v5 = vpop.f32.mrf.mxu3 }
 0x1c3   : > { %2096 = vmatmul.msk.f32.gmra.mxu1 %vm610_vm1, %v2878_v18 }
 0x1c4   : > { %1182 = vmatpush.msrb.mxu3 %v2793_v39  ;;  %1255 = vmatpush.msra.mxu1 %v2755_v11 }
 0x1c5   : > { %2104 = vmatmul.msk.f32.gmra.mxu3 %vm610_vm1, %v2598_v22  ;;  %2100 = vmatmul.msk.f32.gmra.mxu2 %vm610_vm1, %v2594_v21 }
 0x1c6   : > { %1183 = vmatpush.msrb.mxu3 %v2806_v41  ;;  %1256 = vmatpush.msra.mxu1 %v2765_v19 }
 0x1c8   : > { %1184 = vmatpush.msrb.mxu3 %v2816_v44  ;;  %1257 = vmatpush.msra.mxu1 %v2774_v27  ;;  %v649_v11 = vpop.f32.mrf.mxu1 }
 0x1ca   : > { %1185 = vmatpush.msrb.mxu3 %v2825_v46  ;;  %1258 = vmatpush.msra.mxu1 %v2782_v33  ;;  %v767_v19 = vpop.f32.mrf.mxu3  ;;  %v1054_v33 = vld [vmem:[%s3294_s3 + $0x8] sm:$0xff] }
 0x1cb   : > { %2097 = vmatmul.msk.f32.gmra.mxu1 %vm610_vm1, %v2897_v25  ;;  %1155 = vmatpush.msrb.mxu2 %v1054_v33 }
 0x1cc   : > { %1381 = vmatpush.msra.mxu3 %v2741_v4  ;;  %1259 = vmatpush.msra.mxu1 %v2793_v39 }
 0x1cd   : > { %2105 = vmatmul.msk.f32.gmra.mxu3 %vm610_vm1, %v2621_v28  ;;  %2101 = vmatmul.msk.f32.gmra.mxu2 %vm610_vm1, %v2624_v29 }
 0x1ce   : > { %1382 = vmatpush.msra.mxu3 %v2749_v7  ;;  %1260 = vmatpush.msra.mxu1 %v2806_v41 }
 0x1d0   : > { %1383 = vmatpush.msra.mxu3 %v2760_v12  ;;  %1261 = vmatpush.msra.mxu1 %v2816_v44 }
 0x1d2   : > { %1384 = vmatpush.msra.mxu3 %v2769_v26  ;;  %1262 = vmatpush.msra.mxu1 %v2825_v46 }
 0x1d3   : > { %2098 = vmatmul.msk.f32.gmra.mxu1 %vm610_vm1, %v2916_v32 }
 0x1d4   : > { %1385 = vmatpush.msra.mxu3 %v2778_v30 }
 0x1d5   : > { %2106 = vmatmul.msk.f32.gmra.mxu3 %vm610_vm1, %v2645_v35  ;;  %2102 = vmatmul.msk.f32.gmra.mxu2 %vm610_vm1, %v2648_v36 }
 0x1d6   : > { %1386 = vmatpush.msra.mxu3 %v2786_v34 }
 0x1d8   : > { %1387 = vmatpush.msra.mxu3 %v2801_v40 }
 0x1da   : > { %1388 = vmatpush.msra.mxu3 %v2811_v43 }
 0x1dc   : > { %1389 = vmatpush.msra.mxu3 %v2820_v45 }
 0x1dd   : > { %2117 = vmatmul.msk.f32.vlgmr.msrb.gmra.mxu3 %vm610_vm1, %v2573_v15 }
 0x1de   : > { %1390 = vmatpush.msra.mxu3 %v2829_v48 }
 0x1e0   : > { %1391 = vmatpush.msra.mxu3 %v2841_v51 }
 0x1e2   : > { %1392 = vmatpush.msra.mxu3 %v2853_v52 }
 0x1e4   : > { %1531 = vmatpush.msrb.mxu3 %v2741_v4  ;;  %v703_v4 = vpop.f32.mrf.mxu2 }
 0x1e5   : > { %2118 = vmatmul.msk.f32.gmra.mxu3 %vm610_vm1, %v2606_v24  ;;  %v711_v6 = vmax.f32 %v646_v3, %v703_v4  ;;  %v3026_v4 = vpop.permute.xlu0 %2307 }
 0x1e6   : > { %1532 = vmatpush.msrb.mxu3 %v2749_v7 }
 0x1e7   : > { %v772_v7 = vmax.f32 %v711_v6, %v764_v5  ;;  %v2309_v5 = vunpack.i.l.bf16 %v3026_v4 }
 0x1e8   : > { %1533 = vmatpush.msrb.mxu3 %v2760_v12 }
 0x1e9   : > { %777 = vst.msk [vmem:[%s2940_s18 + $0x10] sm:$0xff] %vm774_vm2, %v772_v7  ;;  %v3029_v7 = vpop.permute.xlu1 %2312 }
 0x1ea   : > { %1534 = vmatpush.msrb.mxu3 %v2769_v26 }
 0x1ec   : > { %1535 = vmatpush.msrb.mxu3 %v2778_v30  ;;  %v706_v12 = vpop.f32.mrf.mxu2 }
 0x1ed   : > { %2119 = vmatmul.msk.f32.gmra.mxu3 %vm610_vm1, %v2631_v31  ;;  %v712_v20 = vmax.f32 %v649_v11, %v706_v12  ;;  %v2310_v11 = vunpack.i.h.bf16 %v3026_v4  ;;  %v2314_v12 = vunpack.i.l.bf16 %v3029_v7 }
 0x1ee   : > { %1536 = vmatpush.msrb.mxu3 %v2786_v34 }
 0x1ef   : > { %v773_v26 = vmax.f32 %v712_v20, %v767_v19  ;;  %v3040_v19 = vpop.permute.xlu2 %2317  ;;  %v2315_v20 = vunpack.i.h.bf16 %v3029_v7 }
 0x1f0   : > { %1537 = vmatpush.msrb.mxu3 %v2801_v40 }
 0x1f1   : > { %778 = vst.msk [vmem:[%s2940_s18 + $0x18] sm:$0xff] %vm774_vm2, %v773_v26  ;;  %v2319_v26 = vunpack.i.l.bf16 %v3040_v19  ;;  %s3204_s18 = scalar_lea.vmem %s3302_s11, %s2931_s15 }
 0x1f2   : > { %1538 = vmatpush.msrb.mxu3 %v2811_v43 }
 0x1f4   : > { %1539 = vmatpush.msrb.mxu3 %v2820_v45 }
 0x1f5   : > { %2120 = vmatmul.msk.f32.gmra.mxu3 %vm610_vm1, %v2654_v37 }
 0x1f6   : > { %1540 = vmatpush.msrb.mxu3 %v2829_v48 }
 0x1f8   : > { %1541 = vmatpush.msrb.mxu3 %v2841_v51 }
 0x1fa   : > { %1542 = vmatpush.msrb.mxu3 %v2853_v52 }
 0x1fd   : > { %2137 = vmatmul.msk.f32.vlgmr.msra.gmra.mxu3 %vm610_vm1, %v2566_v14  ;;  %v1053_v14 = vld [vmem:[%s3294_s3] sm:$0xff] }
 0x1fe   : > { %1156 = vmatpush.msrb.mxu2 %v1053_v14  ;;  %v3067_v14 = vpop.permute.xlu2 %2332 }
 0x205   : > { %2138 = vmatmul.msk.f32.gmra.mxu3 %vm610_vm1, %v2594_v21 }
 0x20d   : > { %2139 = vmatmul.msk.f32.gmra.mxu3 %vm610_vm1, %v2624_v29 }
 0x214   : > { %v844_v27 = vpop.f32.mrf.mxu1 }
 0x215   : > { %2140 = vmatmul.msk.f32.gmra.mxu3 %vm610_vm1, %v2648_v36 }
 0x21b   : > { %v906_v30 = vpop.f32.mrf.mxu3 }
 0x21d   : > { %v873_v34 = vpop.f32.mrf.mxu2  ;;  %v847_v38 = vpop.f32.mrf.mxu1  ;;  %2157 = vmatmul.msk.f32.vlgmr.msrb.gmra.mxu3 %vm610_vm1, %v2573_v15 }
 0x21e   : > { %v885_v42 = vmax.f32 %v844_v27, %v873_v34  ;;  %v3059_v34 = vpop.permute.xlu1 %2327 }
 0x220   : > { %v918_v44 = vmax.f32 %v885_v42, %v906_v30  ;;  %v2320_v30 = vunpack.i.h.bf16 %v3040_v19 }
 0x224   : > { %v909_v21 = vpop.f32.mrf.mxu3 }
 0x225   : > { %2158 = vmatmul.msk.f32.gmra.mxu3 %vm610_vm1, %v2606_v24 }
 0x226   : > { %v876_v29 = vpop.f32.mrf.mxu2 }
 0x227   : > { %v850_v36 = vpop.f32.mrf.mxu1  ;;  %v886_v46 = vmax.f32 %v847_v38, %v876_v29  ;;  %v2330_v29 = vunpack.i.h.bf16 %v3059_v34 }
 0x229   : > { %v919_v48 = vmax.f32 %v886_v46, %v909_v21 }
 0x22d   : > { %v912_v39 = vpop.f32.mrf.mxu3  ;;  %2159 = vmatmul.msk.f32.gmra.mxu3 %vm610_vm1, %v2631_v31  ;;  %v2148_v31 = vld [vmem:[%s3296_s5 + $0x38] sm:$0xff] }
 0x22f   : > { %v879_v40 = vpop.f32.mrf.mxu2 }
 0x230   : > { %v853_v41 = vpop.f32.mrf.mxu1  ;;  %v887_v52 = vmax.f32 %v850_v36, %v879_v40  ;;  %v2334_v36 = vunpack.i.l.bf16 %v3067_v14  ;;  %v2132_v40 = vld [vmem:[%s3294_s3 + $0x38] sm:$0xff] }
 0x231   : > { %1305 = vmatpush.msra.mxu2 %v2132_v40 }
 0x232   : > { %v920_v56 = vmax.f32 %v887_v52, %v912_v39  ;;  %v2335_v39 = vunpack.i.h.bf16 %v3067_v14  ;;  %v2162_v52 = vld [vmem:[%s3296_s5 + $0x48] sm:$0xff] }
 0x235   : > { %2160 = vmatmul.msk.f32.gmra.mxu3 %vm610_vm1, %v2654_v37 }
 0x237   : > { %v882_v43 = vpop.f32.mrf.mxu2 }
 0x238   : > { %v915_v15 = vpop.f32.mrf.mxu3  ;;  %v967_v24 = vpop.f32.mrf.mxu1  ;;  %v888_v60 = vmax.f32 %v853_v41, %v882_v43  ;;  %v1406_v41 = vld [vmem:[%s3296_s5] sm:$0xff] }
 0x239   : > { %v979_v45 = vmax.f32 %v918_v44, %v967_v24 }
 0x23a   : > { %v921_v62 = vmax.f32 %v888_v60, %v915_v15 }
 0x23b   : > { %983 = vst.msk [vmem:[%s2997_s27] sm:$0xff] %vm774_vm2, %v979_v45 }
 0x240   : > { %v1072_v37 = vpop.f32.mrf.mxu3  ;;  %v1041_v47 = vpop.f32.mrf.mxu2 }
 0x241   : > { %2109 = vmatmul.msk.f32.vlgmr.msrb.gmra.mxu1 %vm1087_vm3, %v1072_v37  ;;  %v970_v50 = vpop.f32.mrf.mxu1  ;;  %2113 = vmatmul.msk.f32.vlgmr.msrb.gmra.mxu2 %vm1087_vm3, %v1041_v47 }
 0x242   : > { %1469 = vmatpush.msrb.mxu1 %v2148_v31  ;;  %v980_v51 = vmax.f32 %v919_v48, %v970_v50 }
 0x244   : > { %1470 = vmatpush.msrb.mxu1 %v2147_v49  ;;  %984 = vst.msk [vmem:[%s2997_s27 + $0x8] sm:$0xff] %vm774_vm2, %v980_v51  ;;  %v2164_v51 = vld [vmem:[%s3296_s5 + $0x58] sm:$0xff] }
 0x246   : > { %1471 = vmatpush.msrb.mxu1 %v2146_v10  ;;  %v2163_v10 = vld [vmem:[%s3296_s5 + $0x50] sm:$0xff] }
 0x248   : > { %1472 = vmatpush.msrb.mxu1 %v2145_v54  ;;  %v1075_v55 = vpop.f32.mrf.mxu3  ;;  %v1044_v57 = vpop.f32.mrf.mxu2  ;;  %v2161_v54 = vld [vmem:[%s3296_s5 + $0x40] sm:$0xff] }
 0x249   : > { %2110 = vmatmul.msk.f32.gmra.mxu1 %vm1087_vm3, %v1075_v55  ;;  %v973_v58 = vpop.f32.mrf.mxu1  ;;  %2114 = vmatmul.msk.f32.gmra.mxu2 %vm1087_vm3, %v1044_v57 }
 0x24a   : > { %v981_v59 = vmax.f32 %v920_v56, %v973_v58 }
 0x24c   : > { %985 = vst.msk [vmem:[%s2997_s27 + $0x10] sm:$0xff] %vm774_vm2, %v981_v59 }
 0x250   : > { %v1078_v61 = vpop.f32.mrf.mxu3  ;;  %v1047_v63 = vpop.f32.mrf.mxu2 }
 0x251   : > { %2111 = vmatmul.msk.f32.gmra.mxu1 %vm1087_vm3, %v1078_v61  ;;  %v976_v0 = vpop.f32.mrf.mxu1  ;;  %2115 = vmatmul.msk.f32.gmra.mxu2 %vm1087_vm3, %v1047_v63 }
 0x252   : > { %v982_v1 = vmax.f32 %v921_v62, %v976_v0 }
 0x254   : > { %987 = vst.msk [vmem:[%s2997_s27 + $0x18] sm:$0x7f] %vm986_vm4, %v982_v1 }
 0x258   : > { %v1081_v2 = vpop.f32.mrf.mxu3  ;;  %v1050_v3 = vpop.f32.mrf.mxu2 }
 0x259   : > { %2112 = vmatmul.msk.f32.gmra.mxu1 %vm1087_vm3, %v1081_v2  ;;  %2116 = vmatmul.msk.f32.gmra.mxu2 %vm1087_vm3, %v1050_v3 }
 0x260   : > { %v1187_v6 = vpop.f32.mrf.mxu3 }
 0x261   : > { %2123 = vmatmul.msk.f32.vlgmr.msrb.gmra.mxu0 %vm1087_vm3, %v1187_v6  ;;  %2127 = vmatmul.msk.f32.vlgmr.msra.gmra.mxu1 %vm610_vm1, %v2861_v53  ;;  %v3048_v53 = vpop.permute.xlu0 %2322 }
 0x262   : > { %1683 = vmatpush.msra.mxu1 %v2309_v5  ;;  %v2324_v33 = vunpack.i.l.bf16 %v3048_v53  ;;  %v2325_v38 = vunpack.i.h.bf16 %v3048_v53  ;;  %1585 = vmatpush.msrb.mxu0 %v2164_v51 }
 0x264   : > { %1684 = vmatpush.msra.mxu1 %v2310_v11  ;;  %1586 = vmatpush.msrb.mxu0 %v2163_v10  ;;  %v2182_v10 = vld [vmem:[%s3298_s7 + $0x48] sm:$0xff] }
 0x266   : > { %1685 = vmatpush.msra.mxu1 %v2314_v12  ;;  %1587 = vmatpush.msrb.mxu0 %v2162_v52 }
 0x268   : > { %1686 = vmatpush.msra.mxu1 %v2315_v20  ;;  %v1190_v27 = vpop.f32.mrf.mxu3  ;;  %1588 = vmatpush.msrb.mxu0 %v2161_v54 }
 0x269   : > { %2128 = vmatmul.msk.f32.gmra.mxu1 %vm610_vm1, %v2878_v18  ;;  %2124 = vmatmul.msk.f32.gmra.mxu0 %vm1087_vm3, %v1190_v27  ;;  %v2329_v18 = vunpack.i.l.bf16 %v3059_v34 }
 0x26a   : > { %1687 = vmatpush.msra.mxu1 %v2319_v26 }
 0x26c   : > { %1688 = vmatpush.msra.mxu1 %v2320_v30 }
 0x26e   : > { %1689 = vmatpush.msra.mxu1 %v2324_v33 }
 0x270   : > { %1690 = vmatpush.msra.mxu1 %v2325_v38  ;;  %v1193_v21 = vpop.f32.mrf.mxu3 }
 0x271   : > { %2129 = vmatmul.msk.f32.gmra.mxu1 %vm610_vm1, %v2897_v25  ;;  %2125 = vmatmul.msk.f32.gmra.mxu0 %vm1087_vm3, %v1193_v21 }
 0x272   : > { %1691 = vmatpush.msra.mxu1 %v2329_v18 }
 0x274   : > { %1692 = vmatpush.msra.mxu1 %v2330_v29 }
 0x276   : > { %1693 = vmatpush.msra.mxu1 %v2334_v36 }
 0x278   : > { %1694 = vmatpush.msra.mxu1 %v2335_v39  ;;  %v1196_v25 = vpop.f32.mrf.mxu3 }
 0x279   : > { %2130 = vmatmul.msk.f32.gmra.mxu1 %vm610_vm1, %v2916_v32  ;;  %2126 = vmatmul.msk.f32.gmra.mxu0 %vm1087_vm3, %v1196_v25  ;;  %v2131_v32 = vld [vmem:[%s3294_s3 + $0x30] sm:$0xff]  ;;  %v2188_v25 = vld [vmem:[%s3298_s7 + $0x78] sm:$0xff] }
 0x27a   : > { %1306 = vmatpush.msra.mxu2 %v2131_v32  ;;  %1787 = vmatpush.msra.mxu3 %v2188_v25 }
 0x280   : > { %v1394_v15 = vpop.f32.mrf.mxu3 }
 0x281   : > { %2141 = vmatmul.msk.f32.vlgmr.msra.gmra.mxu0 %vm610_vm1, %v2576_v16  ;;  %v1409_v16 = vld [vmem:[%s3296_s5 + $0x18] sm:$0xff] }
 0x282   : > { %1510 = vmatpush.msrb.mxu2 %v1409_v16  ;;  %v2187_v16 = vld [vmem:[%s3298_s7 + $0x70] sm:$0xff] }
 0x283   : > { %1788 = vmatpush.msra.mxu3 %v2187_v16 }
 0x288   : > { %v1397_v44 = vpop.f32.mrf.mxu3 }
 0x289   : > { %2142 = vmatmul.msk.f32.gmra.mxu0 %vm610_vm1, %v2598_v22  ;;  %v1408_v22 = vld [vmem:[%s3296_s5 + $0x10] sm:$0xff] }
 0x28a   : > { %1511 = vmatpush.msrb.mxu2 %v1408_v22  ;;  %v1712_v22 = vld [vmem:[%s3298_s7 + $0x38] sm:$0xff] }
 0x28b   : > { %1822 = vmatpush.msra.mxu0 %v1712_v22 }
 0x290   : > { %v1400_v46 = vpop.f32.mrf.mxu3 }
 0x291   : > { %2143 = vmatmul.msk.f32.gmra.mxu0 %vm610_vm1, %v2621_v28  ;;  %v1407_v28 = vld [vmem:[%s3296_s5 + $0x8] sm:$0xff] }
 0x292   : > { %1512 = vmatpush.msrb.mxu2 %v1407_v28  ;;  %v2186_v28 = vld [vmem:[%s3298_s7 + $0x68] sm:$0xff] }
 0x293   : > { %1789 = vmatpush.msra.mxu3 %v2186_v28 }
 0x294   : > { %1513 = vmatpush.msrb.mxu2 %v1406_v41 }
 0x298   : > { %v1403_v50 = vpop.f32.mrf.mxu3 }
 0x299   : > { %2144 = vmatmul.msk.f32.gmra.mxu0 %vm610_vm1, %v2645_v35 }
 0x2a0   : > { %v1544_v58 = vpop.f32.mrf.mxu3 }
 0x2a1   : > { %2165 = vmatmul.msk.f32.vlgmr.msrb.gmra.mxu0 %vm1444_vm5, %v1544_v58 }
 0x2a8   : > { %v1547_v0 = vpop.f32.mrf.mxu3 }
 0x2a9   : > { %2166 = vmatmul.msk.f32.gmra.mxu0 %vm1444_vm5, %v1547_v0  ;;  %v1705_v0 = vld [vmem:[%s3298_s7] sm:$0xff] }
 0x2b0   : > { %v1550_v6 = vpop.f32.mrf.mxu3 }
 0x2b1   : > { %2167 = vmatmul.msk.f32.gmra.mxu0 %vm1444_vm5, %v1550_v6 }
 0x2be   : > { %v1117_v35 = vpop.f32.mrf.mxu1 }
 0x2c4   : > { %v1158_v24 = vpop.f32.mrf.mxu2 }
 0x2c5   : > { %v1159_v31 = vadd.f32 %v1158_v24, %v1117_v35  ;;  %v1710_v24 = vld [vmem:[%s3298_s7 + $0x28] sm:$0xff] }
 0x2c6   : > { %v1120_v42 = vpop.f32.mrf.mxu1 }
 0x2cc   : > { %v1161_v48 = vpop.f32.mrf.mxu2 }
 0x2cd   : > { %v1162_v55 = vadd.f32 %v1161_v48, %v1120_v42  ;;  %v1709_v48 = vld [vmem:[%s3298_s7 + $0x20] sm:$0xff] }
 0x2ce   : > { %v1123_v43 = vpop.f32.mrf.mxu1 }
 0x2d4   : > { %v1164_v60 = vpop.f32.mrf.mxu2 }
 0x2d5   : > { %v1165_v61 = vadd.f32 %v1164_v60, %v1123_v43  ;;  %v1711_v43 = vld [vmem:[%s3298_s7 + $0x30] sm:$0xff] }
 0x2d6   : > { %v1126_v45 = vpop.f32.mrf.mxu1  ;;  %1823 = vmatpush.msra.mxu0 %v1711_v43  ;;  %v1707_v60 = vld [vmem:[%s3298_s7 + $0x10] sm:$0xff] }
 0x2d8   : > { %1824 = vmatpush.msra.mxu0 %v1710_v24 }
 0x2da   : > { %1825 = vmatpush.msra.mxu0 %v1709_v48 }
 0x2dc   : > { %v1167_v2 = vpop.f32.mrf.mxu2 }
 0x2dd   : > { %v1168_v3 = vadd.f32 %v1167_v2, %v1126_v45  ;;  %v2184_v45 = vld [vmem:[%s3298_s7 + $0x58] sm:$0xff] }
 0x2de   : > { %v1231_v37 = vpop.f32.mrf.mxu0  ;;  %v1264_v47 = vpop.f32.mrf.mxu1 }
 0x2df   : > { %v3112_v49 = vadd.f32 %v1231_v37, %v1159_v31  ;;  %2133 = vmatmul.msk.f32.vlgmr.msra.gmra.mxu2 %vm1087_vm3, %v1264_v47 }
 0x2e0   : > { %1738 = vmatpush.msra.mxu2 %v2309_v5 }
 0x2e2   : > { %1739 = vmatpush.msra.mxu2 %v2310_v11 }
 0x2e4   : > { %1740 = vmatpush.msra.mxu2 %v2314_v12  ;;  %v1553_v12 = vpop.f32.mrf.mxu3 }
 0x2e5   : > { %2168 = vmatmul.msk.f32.gmra.mxu0 %vm1444_vm5, %v1553_v12 }
 0x2e6   : > { %1741 = vmatpush.msra.mxu2 %v2315_v20  ;;  %v1267_v56 = vpop.f32.mrf.mxu1  ;;  %v1234_v57 = vpop.f32.mrf.mxu0 }
 0x2e7   : > { %2134 = vmatmul.msk.f32.gmra.mxu2 %vm1087_vm3, %v1267_v56  ;;  %v3136_v59 = vadd.f32 %v1234_v57, %v1162_v55  ;;  %v2181_v57 = vld [vmem:[%s3298_s7 + $0x40] sm:$0xff] }
 0x2e8   : > { %1742 = vmatpush.msra.mxu2 %v2319_v26  ;;  %v1622_v26 = vmul.u32 4, %v2554_v8  ;;  %v1624_v8 = vmul.u32 4, %v2601_v23 }
 0x2ea   : > { %1743 = vmatpush.msra.mxu2 %v2320_v30  ;;  %v1713_v53 = vadd.s32 1, %v1622_v26  ;;  %v1623_v30 = vmul.u32 4, %v2583_v17  ;;  %vm1625_vm7 = vcmp.eq.s32.totalorder %v2556_v9, %v1622_v26  ;;  %v1715_v17 = vadd.s32 1, %v1624_v8 }
 0x2eb   : > { %vm1627_vm11 = vcmp.eq.s32.totalorder %v2556_v9, %v1624_v8 }
 0x2ec   : > { %1744 = vmatpush.msra.mxu2 %v2324_v33  ;;  %vm1716_vm6 = vcmp.eq.s32.totalorder %v2556_v9, %v1713_v53  ;;  %v1714_v34 = vadd.s32 1, %v1623_v30  ;;  %vm1626_vm9 = vcmp.eq.s32.totalorder %v2556_v9, %v1623_v30  ;;  %vm1718_vm10 = vcmp.eq.s32.totalorder %v2556_v9, %v1715_v17 }
 0x2ed   : > { %v2175_v33 = vsel %vm1716_vm6, 1.0, %v2352_v13  ;;  %v2170_v14 = vsel %vm1626_vm9, 1.0, %v2352_v13  ;;  %v2177_v21 = vsel %vm1718_vm10, 1.0, %v2352_v13  ;;  %v2171_v23 = vsel %vm1627_vm11, 1.0, %v2352_v13 }
 0x2ee   : > { %1745 = vmatpush.msra.mxu2 %v2325_v38  ;;  %v1270_v62 = vpop.f32.mrf.mxu1  ;;  %v1237_v63 = vpop.f32.mrf.mxu0  ;;  %v2169_v38 = vsel %vm1625_vm7, 1.0, %v2352_v13  ;;  %vm1717_vm8 = vcmp.eq.s32.totalorder %v2556_v9, %v1714_v34 }
 0x2ef   : > { %2135 = vmatmul.msk.f32.gmra.mxu2 %vm1087_vm3, %v1270_v62  ;;  %v3148_v1 = vadd.f32 %v1237_v63, %v1165_v61  ;;  %v1706_v61 = vld [vmem:[%s3298_s7 + $0x8] sm:$0xff] }
 0x2f0   : > { %1746 = vmatpush.msra.mxu2 %v2329_v18  ;;  %v2176_v18 = vsel %vm1717_vm8, 1.0, %v2352_v13 }
 0x2f2   : > { %1747 = vmatpush.msra.mxu2 %v2330_v29  ;;  %v2337_v29 = vld [vmem:[%s3295_s4] ss:$0 sm:$0xff] }
 0x2f4   : > { %1748 = vmatpush.msra.mxu2 %v2334_v36 }
 0x2f6   : > { %1749 = vmatpush.msra.mxu2 %v2335_v39  ;;  %v1273_v4 = vpop.f32.mrf.mxu1  ;;  %v1240_v5 = vpop.f32.mrf.mxu0 }
 0x2f7   : > { %2136 = vmatmul.msk.f32.gmra.mxu2 %vm1087_vm3, %v1273_v4  ;;  %v3160_v7 = vadd.f32 %v1240_v5, %v1168_v3 }
 0x2fe   : > { %v1427_v11 = vpop.f32.mrf.mxu0 }
 0x2ff   : > { %2153 = vmatmul.msk.f32.vlgmr.msrb.gmra.mxu2 %vm1444_vm5, %v1394_v15  ;;  %2149 = vmatmul.msk.f32.vlgmr.msrb.gmra.mxu1 %vm1444_vm5, %v1427_v11 }
 0x306   : > { %v1430_v19 = vpop.f32.mrf.mxu0 }
 0x307   : > { %2154 = vmatmul.msk.f32.gmra.mxu2 %vm1444_vm5, %v1397_v44  ;;  %2150 = vmatmul.msk.f32.gmra.mxu1 %vm1444_vm5, %v1430_v19  ;;  %v2185_v44 = vld [vmem:[%s3298_s7 + $0x60] sm:$0xff] }
 0x308   : > { %1790 = vmatpush.msra.mxu3 %v2185_v44 }
 0x30a   : > { %1791 = vmatpush.msra.mxu3 %v2184_v45 }
 0x30e   : > { %v1433_v20 = vpop.f32.mrf.mxu0 }
 0x30f   : > { %2155 = vmatmul.msk.f32.gmra.mxu2 %vm1444_vm5, %v1400_v46  ;;  %2151 = vmatmul.msk.f32.gmra.mxu1 %vm1444_vm5, %v1433_v20 }
 0x316   : > { %v1436_v27 = vpop.f32.mrf.mxu0 }
 0x317   : > { %2156 = vmatmul.msk.f32.gmra.mxu2 %vm1444_vm5, %v1403_v50  ;;  %2152 = vmatmul.msk.f32.gmra.mxu1 %vm1444_vm5, %v1436_v27  ;;  %v1708_v50 = vld [vmem:[%s3298_s7 + $0x18] sm:$0xff] }
 0x318   : > { %1826 = vmatpush.msra.mxu0 %v1708_v50 }
 0x31a   : > { %1827 = vmatpush.msra.mxu0 %v1707_v60 }
 0x31c   : > { %1828 = vmatpush.msra.mxu0 %v1706_v61 }
 0x31e   : > { %v1590_v51 = vpop.f32.mrf.mxu0  ;;  %1829 = vmatpush.msra.mxu0 %v1705_v0 }
 0x31f   : > { %2178 = vmatmul.msk.f32.vlgmr.msra.gmra.mxu2 %vm610_vm1, %v2175_v33  ;;  %2172 = vmatmul.msk.f32.vlgmr.msra.gmra.mxu1 %vm610_vm1, %v2169_v38 }
 0x327   : > { %2179 = vmatmul.msk.f32.gmra.mxu2 %vm610_vm1, %v2176_v18  ;;  %2173 = vmatmul.msk.f32.gmra.mxu1 %vm610_vm1, %v2170_v14 }
 0x32f   : > { %2180 = vmatmul.msk.f32.gmra.mxu2 %vm610_vm1, %v2177_v21  ;;  %2174 = vmatmul.msk.f32.gmra.mxu1 %vm610_vm1, %v2171_v23  ;;  %vm1339_vm1 = vcmask 129024  }
 0x362   : > { %v1308_v36 = vpop.f32.mrf.mxu2 }
 0x363   : > { %v1320_v39 = vadd.f32 %v1308_v36, %v3112_v49  ;;  %v2183_v49 = vld [vmem:[%s3298_s7 + $0x50] sm:$0xff] }
 0x364   : > { %1792 = vmatpush.msra.mxu3 %v2183_v49 }
 0x365   : > { %v1328_v9 = vadd.f32 %v2337_v29, %v1320_v39 }
 0x366   : > { %1793 = vmatpush.msra.mxu3 %v2182_v10 }
 0x367   : > { %v1332_v13 = vmax.f32 %v1328_v9, 0.0 }
 0x368   : > { %1794 = vmatpush.msra.mxu3 %v2181_v57 }
 0x369   : > { %1336 = vst.msk [vmem:[%s3204_s18] sm:$0xff] %vm1087_vm3, %v1332_v13  ;;  %v2339_v13 = vld [vmem:[%s3299_s8] ss:$0 sm:$0xff] }
 0x36a   : > { %v1311_v40 = vpop.f32.mrf.mxu2 }
 0x36b   : > { %v1321_v32 = vadd.f32 %v1311_v40, %v3136_v59  ;;  %v2338_v59 = vld [vmem:[%s3297_s6] ss:$0 sm:$0xff] }
 0x36d   : > { %v1329_v35 = vadd.f32 %v2337_v29, %v1321_v32 }
 0x36f   : > { %v1333_v41 = vmax.f32 %v1329_v35, 0.0 }
 0x371   : > { %1337 = vst.msk [vmem:[%s3204_s18 + $0x8] sm:$0xff] %vm1087_vm3, %v1333_v41 }
 0x372   : > { %v1314_v42 = vpop.f32.mrf.mxu2 }
 0x373   : > { %v1322_v15 = vadd.f32 %v1314_v42, %v3148_v1  ;;  %v1593_v1 = vpop.f32.mrf.mxu0 }
 0x375   : > { %v1330_v46 = vadd.f32 %v2337_v29, %v1322_v15 }
 0x377   : > { %v1334_v31 = vmax.f32 %v1330_v46, 0.0 }
 0x379   : > { %1338 = vst.msk [vmem:[%s3204_s18 + $0x10] sm:$0xff] %vm1087_vm3, %v1334_v31 }
 0x37a   : > { %v1317_v37 = vpop.f32.mrf.mxu2 }
 0x37b   : > { %v1323_v47 = vadd.f32 %v1317_v37, %v3160_v7  ;;  %v1596_v12 = vpop.f32.mrf.mxu0 }
 0x37c   : > { %v1474_v54 = vpop.f32.mrf.mxu1 }
 0x37d   : > { %v1331_v52 = vadd.f32 %v2337_v29, %v1323_v47 }
 0x37f   : > { %v1335_v55 = vmax.f32 %v1331_v52, 0.0 }
 0x381   : > { %1340 = vst.msk [vmem:[%s3204_s18 + $0x18] sm:$0x7f] %vm1339_vm1, %v1335_v55 }
 0x382   : > { %v1515_v56 = vpop.f32.mrf.mxu2 }
 0x383   : > { %v1516_v58 = vadd.f32 %v1515_v56, %v1474_v54  ;;  %v1599_v38 = vpop.f32.mrf.mxu0 }
 0x384   : > { %v1477_v63 = vpop.f32.mrf.mxu1 }
 0x385   : > { %v1602_v62 = vadd.f32 %v1590_v51, %v1516_v58 }
 0x387   : > { %v1610_v2 = vadd.f32 %v2338_v59, %v1602_v62 }
 0x389   : > { %v1614_v3 = vmax.f32 %v1610_v2, 0.0 }
 0x38a   : > { %v1518_v4 = vpop.f32.mrf.mxu2 }
 0x38b   : > { %1618 = vst.msk [vmem:[%s484_s28] sm:$0xff] %vm1444_vm5, %v1614_v3  ;;  %v1519_v5 = vadd.f32 %v1518_v4, %v1477_v63 }
 0x38c   : > { %v1480_v7 = vpop.f32.mrf.mxu1 }
 0x38d   : > { %v1603_v6 = vadd.f32 %v1593_v1, %v1519_v5 }
 0x38f   : > { %v1611_v11 = vadd.f32 %v2338_v59, %v1603_v6 }
 0x391   : > { %v1615_v19 = vmax.f32 %v1611_v11, 0.0 }
 0x392   : > { %v1521_v20 = vpop.f32.mrf.mxu2 }
 0x393   : > { %1619 = vst.msk [vmem:[%s484_s28 + $0x8] sm:$0xff] %vm1444_vm5, %v1615_v19  ;;  %v1522_v26 = vadd.f32 %v1521_v20, %v1480_v7 }
 0x394   : > { %v1483_v27 = vpop.f32.mrf.mxu1 }
 0x395   : > { %v1604_v53 = vadd.f32 %v1596_v12, %v1522_v26 }
 0x397   : > { %v1612_v30 = vadd.f32 %v2338_v59, %v1604_v53 }
 0x399   : > { %v1616_v33 = vmax.f32 %v1612_v30, 0.0 }
 0x39a   : > { %v1524_v34 = vpop.f32.mrf.mxu2 }
 0x39b   : > { %1620 = vst.msk [vmem:[%s484_s28 + $0x10] sm:$0xff] %vm1444_vm5, %v1616_v33  ;;  %v1525_v8 = vadd.f32 %v1524_v34, %v1483_v27 }
 0x39c   : > { %v1696_v17 = vpop.f32.mrf.mxu1 }
 0x39d   : > { %v1605_v18 = vadd.f32 %v1599_v38, %v1525_v8  ;;  %2192 = vmatmul.msk.f32.vlgmr.msra.gmra.mxu0 %vm1769_vm12, %v1696_v17 }
 0x39f   : > { %v1613_v14 = vadd.f32 %v2338_v59, %v1605_v18 }
 0x3a1   : > { %v1617_v21 = vmax.f32 %v1613_v14, 0.0 }
 0x3a2   : > { %v1751_v23 = vpop.f32.mrf.mxu2 }
 0x3a3   : > { %1621 = vst.msk [vmem:[%s484_s28 + $0x18] sm:$0xff] %vm1444_vm5, %v1617_v21  ;;  %2189 = vmatmul.msk.f32.vlgmr.msra.gmra.mxu3 %vm1769_vm12, %v1751_v23 }
 0x3a4   : > { %v1699_v29 = vpop.f32.mrf.mxu1 }
 0x3a5   : > { %2193 = vmatmul.msk.f32.gmra.mxu0 %vm1769_vm12, %v1699_v29 }
 0x3aa   : > { %v1754_v36 = vpop.f32.mrf.mxu2 }
 0x3ab   : > { %2190 = vmatmul.msk.f32.gmra.mxu3 %vm1769_vm12, %v1754_v36 }
 0x3ac   : > { %v1702_v39 = vpop.f32.mrf.mxu1 }
 0x3ad   : > { %2194 = vmatmul.msk.f32.gmra.mxu0 %vm1769_vm12, %v1702_v39 }
 0x3b2   : > { %v1757_v25 = vpop.f32.mrf.mxu2 }
 0x3b3   : > { %2191 = vmatmul.msk.f32.gmra.mxu3 %vm1769_vm12, %v1757_v25 }
 0x41a   : > { %v1831_v9 = vpop.f32.mrf.mxu0 }
 0x422   : > { %v1834_v22 = vpop.f32.mrf.mxu0 }
 0x426   : > { %v1796_v40 = vpop.f32.mrf.mxu3 }
 0x427   : > { %v1832_v32 = vadd.f32 %v1831_v9, %v1796_v40 }
 0x429   : > { %v1844_v16 = vadd.f32 %v2339_v13, %v1832_v32 }
 0x42a   : > { %v1837_v43 = vpop.f32.mrf.mxu0 }
 0x42b   : > { %v1847_v28 = vmax.f32 %v1844_v16, 0.0 }
 0x42d   : > { %1850 = vst.msk [vmem:[%s489_s17] sm:$0xff] %vm1769_vm12, %v1847_v28 }
 0x42e   : > { %v1799_v35 = vpop.f32.mrf.mxu3 }
 0x42f   : > { %v1835_v41 = vadd.f32 %v1834_v22, %v1799_v35 }
 0x431   : > { %v1845_v42 = vadd.f32 %v2339_v13, %v1835_v41 }
 0x433   : > { %v1848_v15 = vmax.f32 %v1845_v42, 0.0 }
 0x435   : > { %1851 = vst.msk [vmem:[%s489_s17 + $0x8] sm:$0xff] %vm1769_vm12, %v1848_v15 }
 0x436   : > { %v1802_v44 = vpop.f32.mrf.mxu3 }
 0x437   : > { %v1838_v24 = vadd.f32 %v1837_v43, %v1802_v44 }
 0x439   : > { %v1846_v45 = vadd.f32 %v2339_v13, %v1838_v24 }
 0x43b   : > { %v1849_v46 = vmax.f32 %v1846_v45, 0.0 }
 0x43d   : > { %1852 = vst.msk [vmem:[%s489_s17 + $0x10] sm:$0xff] %vm1769_vm12, %v1849_v46 }
 0x43e PF: > { %s24_s25 = sadd.s32 1, %s2346_s25  }
 0x43f   : > { %p21_p4 = scmp.ge.s32.totalorder %s24_s25, 4  }
 0x441   :  { %23 = sbr.rel (!%p21_p4) target bundleno = 1 (0x1), region = 140 }

</bundles_post_ra>
